<compile_context>
chip_gen: v6e
topology: v6e:2x2x1
jax: 0.10.0
libtpu: 0.0.40
codegen_flags: <defaults>
</compile_context>

<pallas_src>
import jax
import jax.numpy as jnp
import numpy as np
from jax import lax
from jax.experimental import pallas as pl
from jax.experimental.pallas import tpu as pltpu


def _round_up(x, m):
    return (x + m - 1) // m * m


# ---------------------------------------------------------------------------
# Fused Pallas kernel: all RNN layers + predictor in one invocation
# ---------------------------------------------------------------------------

def _make_fused_rnn_kernel(seq_len, bp, feat):
    """Build the fused kernel with static time extent / tile sizes baked in."""

    def kernel(x_ref, len_ref, wih_ref, whh_ref, b_ref, wpred_ref, bpred_ref,
               out_ref, hid_ref, logit_ref, act_ref):
        # x_ref    : (S*Bp, F) f32   padded time-major embedding (fetched once)
        # len_ref  : (Bp, 1)   i32   sequence lengths (padded rows are 0)
        # wih_ref  : (F, F)    bf16  this layer's input->hidden weights (zero padded)
        # whh_ref  : (F, F)    bf16  this layer's hidden->hidden weights
        # b_ref    : (1, F)    f32   combined bias (b_ih + b_hh)
        # wpred_ref: (F, F)    bf16  predictor weights (col 0 real)
        # bpred_ref: (1, F)    f32   predictor bias
        # out_ref  : (S*Bp, F) f32   this layer's padded output (time-major, flat)
        # hid_ref  : (Bp, F)   f32   final hidden of last layer (resident output)
        # logit_ref: (Bp, F)   f32   predictor output padded to lane width (resident)
        # act_ref  : (S*Bp, F) f32   inter-layer activation carried in VMEM
        layer = pl.program_id(0)
        n_layers = pl.num_programs(0)

        # Layer input: padded embedding for layer 0, previous layer's padded
        # output (left in act_ref by the previous grid iteration) afterwards.
        @pl.when(layer == 0)
        def _():
            act_ref[...] = x_ref[...]

        # Hoisted, time-parallel input projection (one big MXU matmul per layer).
        # Gates are staged directly in out_ref: every row is read once in the loop
        # and the whole block is overwritten by the bulk copy afterwards, so no
        # separate gates scratch slab and no pre-zeroing are needed.
        out_ref[...] = (
            jnp.dot(act_ref[...].astype(jnp.bfloat16), wih_ref[...],
                    preferred_element_type=jnp.float32) + b_ref[...])

        whh = whh_ref[...]                       # bf16, kept in vregs across steps
        lengths = len_ref[...]                   # (Bp, 1) int32, loaded once

        # Serial recurrence, fully unrolled (static trip count).  The hidden state
        # is a plain loop-carried value -> stays in vregs, no per-step VMEM store.
        h = jnp.zeros((bp, feat), jnp.float32)
        for t in range(seq_len):
            row = t * bp
            gates_t = out_ref[pl.ds(row, bp), :]                     # X@W_ih + b
            pre = gates_t + jnp.dot(h.astype(jnp.bfloat16), whh,
                                    preferred_element_type=jnp.float32)
            h_new = jnp.tanh(pre)
            active = lengths > t                 # packed-seq mask, (Bp, 1)
            h = jnp.where(active, h_new, h)      # hidden freezes at t = len-1
            act_ref[pl.ds(row, bp), :] = jnp.where(active, h_new, 0.0)

        # Single bulk lane-dense store of this layer's padded output; act_ref also
        # feeds the next layer's input projection.
        out_ref[...] = act_ref[...]

        # Last layer: store final hidden and the fused predictor logits.
        @pl.when(layer == n_layers - 1)
        def _():
            hid_ref[...] = h
            logit_ref[...] = (
                jnp.dot(h.astype(jnp.bfloat16), wpred_ref[...],
                        preferred_element_type=jnp.float32) + bpred_ref[...])

    return kernel


# ---------------------------------------------------------------------------
# Full forward (JAX glue around the single fused kernel)
# ---------------------------------------------------------------------------

def rnn_forward(text, text_lengths, params):
    # Embedding lookup is a gather -> plain JAX glue.
    embedded = params["embedding"][text].astype(jnp.float32)          # (B, S, E)
    # TODO(synk): nn.Dropout is identity in eval mode; training-mode RNG dropout not modeled.
    B, S, E = embedded.shape
    H = params["rnn_layers"][0]["w_hh"].shape[0]
    O = params["w_pred"].shape[1]
    n_layers = len(params["rnn_layers"])

    Bp = _round_up(max(B, 8), 8)              # sublane padding
    F = _round_up(max(E, H), 128)             # lane padding: common feature width

    # Time-major, (8,128)-padded, flattened to (S*Bp, F).
    x_tm = jnp.transpose(embedded, (1, 0, 2))                          # (S, B, E)
    x_pad = (jnp.zeros((S, Bp, F), jnp.float32)
             .at[:, :B, :E].set(x_tm)
             .reshape(S * Bp, F))

    len_pad = jnp.zeros((Bp, 1), jnp.int32).at[:B, 0].set(
        text_lengths.astype(jnp.int32))

    # Per-layer weights: zero-padded to (F, F) (tanh(0)=0 keeps padded lanes zero),
    # staged in bf16 (MXU-native on v5e/v6e/v7x; halves DMA and vreg pressure).
    # Biases stay f32 and are added to the f32 MXU accumulator.
    wih = jnp.zeros((n_layers, F, F), jnp.float32)
    whh = jnp.zeros((n_layers, F, F), jnp.float32)
    bias = jnp.zeros((n_layers, 1, F), jnp.float32)
    for i, lyr in enumerate(params["rnn_layers"]):
        d_in = lyr["w_ih"].shape[0]
        wih = wih.at[i, :d_in, :H].set(lyr["w_ih"])
        whh = whh.at[i, :H, :H].set(lyr["w_hh"])
        bias = bias.at[i, :, :H].set(lyr["b"])
    wih = wih.astype(jnp.bfloat16)
    whh = whh.astype(jnp.bfloat16)

    wpred = (jnp.zeros((F, F), jnp.float32).at[:H, :O].set(params["w_pred"])
             .astype(jnp.bfloat16))
    bpred = jnp.zeros((1, F), jnp.float32).at[:, :O].set(params["b_pred"])

    kernel = _make_fused_rnn_kernel(S, Bp, F)

    out_all, hid, logit_pad = pl.pallas_call(
        kernel,
        out_shape=(jax.ShapeDtypeStruct((n_layers, S * Bp, F), jnp.float32),
                   jax.ShapeDtypeStruct((Bp, F), jnp.float32),
                   jax.ShapeDtypeStruct((Bp, F), jnp.float32)),
        grid_spec=pltpu.PrefetchScalarGridSpec(
            num_scalar_prefetch=0,
            grid=(n_layers,),
            in_specs=[
                pl.BlockSpec((S * Bp, F), lambda l: (0, 0)),        # x (fetched once)
                pl.BlockSpec((Bp, 1), lambda l: (0, 0)),            # lengths
                pl.BlockSpec((None, F, F), lambda l: (l, 0, 0)),    # W_ih[layer]
                pl.BlockSpec((None, F, F), lambda l: (l, 0, 0)),    # W_hh[layer]
                pl.BlockSpec((None, 1, F), lambda l: (l, 0, 0)),    # bias[layer]
                pl.BlockSpec((F, F), lambda l: (0, 0)),             # W_pred
                pl.BlockSpec((1, F), lambda l: (0, 0)),             # b_pred
            ],
            out_specs=[
                pl.BlockSpec((None, S * Bp, F), lambda l: (l, 0, 0)),  # per-layer out
                pl.BlockSpec((Bp, F), lambda l: (0, 0)),               # final hidden
                pl.BlockSpec((Bp, F), lambda l: (0, 0)),               # logits (padded)
            ],
            scratch_shapes=[
                pltpu.VMEM((S * Bp, F), jnp.float32),   # inter-layer activations
            ],
        ),
        compiler_params=pltpu.CompilerParams(
            dimension_semantics=("arbitrary",)),        # layers are a true serial chain
    )(x_pad, len_pad, wih, whh, bias, wpred, bpred)

    # Single transpose + slice at the very end (no per-layer transposes/concats).
    outputs = jnp.transpose(out_all.reshape(n_layers, S, Bp, F),
                            (2, 0, 1, 3))[:B, :, :, :H]               # (B, n_layers, S, H)
    hidden = hid[:B, :H]                                               # (B, H)
    logits = jnp.squeeze(logit_pad[:B, :O], axis=-1)                   # (B,)
    hidden_state = hidden[None]                                        # (1, B, H)
    output_lengths = text_lengths
    return logits, outputs, output_lengths, hidden_state


# ---------------------------------------------------------------------------
# Pure-JAX f32 reference (for correctness check)
# ---------------------------------------------------------------------------

def ref_forward(text, text_lengths, params):
    emb = params["embedding"][text].astype(jnp.float32)      # (B, S, E)
    lengths = text_lengths.astype(jnp.int32)
    x = emb
    outputs = []
    h_last = None
    for layer in params["rnn_layers"]:
        B, S, _ = x.shape
        H = layer["w_hh"].shape[0]

        def step(h, inp):
            xt, t = inp
            h_new = jnp.tanh(xt @ layer["w_ih"] + h @ layer["w_hh"] + layer["b"][0])
            active = (lengths > t)[:, None]
            h_upd = jnp.where(active, h_new, h)
            out = jnp.where(active, h_new, 0.0)
            return h_upd, out

        h0 = jnp.zeros((B, H), jnp.float32)
        hT, outs = jax.lax.scan(step, h0,
                                (jnp.transpose(x, (1, 0, 2)), jnp.arange(S)))
        out_bf = jnp.transpose(outs, (1, 0, 2))
        outputs.append(out_bf[:, None])
        x = out_bf
        h_last = hT
    outputs = jnp.concatenate(outputs, axis=1)
    logits = (h_last @ params["w_pred"] + params["b_pred"][0]).squeeze(-1)
    return logits, outputs, h_last


# ---------------------------------------------------------------------------
# Main
# ---------------------------------------------------------------------------

if __name__ == "__main__":
    vocab_size, embedding_dim, hidden_dim, output_dim = 50, 32, 32, 1
    n_layers, pad_idx = 2, 0
    B, S = 2, 8

    key = jax.random.PRNGKey(0)
    keys = jax.random.split(key, 3 + 3 * n_layers + 1)

    # Deterministic synthetic parameters (shapes follow the torch module's __init__).
    emb = 0.1 * jax.random.normal(keys[0], (vocab_size, embedding_dim), jnp.float32)
    emb = emb.at[pad_idx].set(0.0)                 # padding_idx row initialized to zero

    layers, ki = [], 1
    for i in range(n_layers):
        d_in = embedding_dim if i == 0 else hidden_dim
        w_ih = 0.1 * jax.random.normal(keys[ki], (d_in, hidden_dim), jnp.float32); ki += 1
        w_hh = 0.1 * jax.random.normal(keys[ki], (hidden_dim, hidden_dim), jnp.float32); ki += 1
        b = 0.1 * jax.random.normal(keys[ki], (1, hidden_dim), jnp.float32); ki += 1
        layers.append(dict(w_ih=w_ih, w_hh=w_hh, b=b))  # b = b_ih + b_hh combined

    w_pred = 0.1 * jax.random.normal(keys[ki], (hidden_dim, output_dim), jnp.float32); ki += 1
    b_pred = 0.1 * jax.random.normal(keys[ki], (1, output_dim), jnp.float32)

    params = dict(embedding=emb, rnn_layers=layers, w_pred=w_pred, b_pred=b_pred)

    # Inputs: lengths sorted descending (pack_padded_sequence enforce_sorted default).
    text_lengths = jnp.array([8, 5], dtype=jnp.int32)
    text = jax.random.randint(keys[0], (B, S), 1, vocab_size, dtype=jnp.int32)
    pad_mask = jnp.arange(S)[None, :] >= text_lengths[:, None]
    text = jnp.where(pad_mask, pad_idx, text)

    logits, outputs, output_lengths, hidden_state = rnn_forward(text, text_lengths, params)
    jax.block_until_ready((logits, outputs, output_lengths, hidden_state))

    # Sanity check against the pure-JAX f32 reference (bf16 MXU operands -> 2e-2 tol).
    ref_logits, ref_outputs, ref_hidden = ref_forward(text, text_lengths, params)
    np.testing.assert_allclose(np.asarray(logits), np.asarray(ref_logits),
                               rtol=2e-2, atol=2e-2)
    np.testing.assert_allclose(np.asarray(outputs), np.asarray(ref_outputs),
                               rtol=2e-2, atol=2e-2)
    np.testing.assert_allclose(np.asarray(hidden_state[0]), np.asarray(ref_hidden),
                               rtol=2e-2, atol=2e-2)

    assert logits.shape == (B,)
    assert outputs.shape == (B, n_layers, S, hidden_dim)
    assert hidden_state.shape == (1, B, hidden_dim)
    print("KERNEL_OK")
</pallas_src>

<mosaic_0001>
module attributes {stable_mosaic.version = 11 : i64} {
  func.func @kernel(%arg0: i32, %arg1: memref<64x128xf32, #tpu.memory_space<vmem>>, %arg2: memref<8x1xi32, #tpu.memory_space<vmem>>, %arg3: memref<1x128x128xbf16, #tpu.memory_space<vmem>>, %arg4: memref<1x128x128xbf16, #tpu.memory_space<vmem>>, %arg5: memref<1x1x128xf32, #tpu.memory_space<vmem>>, %arg6: memref<128x128xbf16, #tpu.memory_space<vmem>>, %arg7: memref<1x128xf32, #tpu.memory_space<vmem>>, %arg8: memref<1x64x128xf32, #tpu.memory_space<vmem>>, %arg9: memref<8x128xf32, #tpu.memory_space<vmem>>, %arg10: memref<8x128xf32, #tpu.memory_space<vmem>>, %arg11: memref<64x128xf32, #tpu.memory_space<vmem>>) attributes {dimension_semantics = [#tpu.dimension_semantics<arbitrary>], iteration_bounds = array<i64: 2>, scalar_prefetch = 0 : i64, scratch_operands = 1 : i64, tpu.core_type = #tpu.core_type<tc>, window_params = [{pipeline_mode = #tpu.pipeline_mode<synchronous>, transform_indices = @transform_0, window_bounds = array<i64: 64, 128>}, {pipeline_mode = #tpu.pipeline_mode<synchronous>, transform_indices = @transform_1, window_bounds = array<i64: 8, 1>}, {transform_indices = @transform_2, window_bounds = array<i64: 1, 128, 128>}, {transform_indices = @transform_3, window_bounds = array<i64: 1, 128, 128>}, {transform_indices = @transform_4, window_bounds = array<i64: 1, 1, 128>}, {pipeline_mode = #tpu.pipeline_mode<synchronous>, transform_indices = @transform_5, window_bounds = array<i64: 128, 128>}, {pipeline_mode = #tpu.pipeline_mode<synchronous>, transform_indices = @transform_6, window_bounds = array<i64: 1, 128>}, {transform_indices = @transform_7, window_bounds = array<i64: 1, 64, 128>}, {pipeline_mode = #tpu.pipeline_mode<synchronous>, transform_indices = @transform_8, window_bounds = array<i64: 8, 128>}, {pipeline_mode = #tpu.pipeline_mode<synchronous>, transform_indices = @transform_9, window_bounds = array<i64: 8, 128>}]} {
    %c0_i32 = arith.constant 0 : i32
    %0 = arith.cmpi eq, %arg0, %c0_i32 : i32
    %1 = arith.extui %0 : i1 to i32
    %c0_i32_0 = arith.constant 0 : i32
    %2 = arith.cmpi ne, %1, %c0_i32_0 : i32
    scf.if %2 {
      %c0_74 = arith.constant 0 : index
      %c0_75 = arith.constant 0 : index
      %154 = vector.load %arg1[%c0_74, %c0_75] : memref<64x128xf32, #tpu.memory_space<vmem>>, vector<64x128xf32>
      %c0_76 = arith.constant 0 : index
      %c0_77 = arith.constant 0 : index
      %155 = vector.load %arg11[%c0_76, %c0_77] : memref<64x128xf32, #tpu.memory_space<vmem>>, vector<64x128xf32>
      tpu.vector_store %arg11[%c0_76, %c0_77], %154 {strides = array<i32>} : memref<64x128xf32, #tpu.memory_space<vmem>>, vector<64x128xf32>,
    } else {
    }
    %c0 = arith.constant 0 : index
    %c0_1 = arith.constant 0 : index
    %3 = vector.load %arg11[%c0, %c0_1] : memref<64x128xf32, #tpu.memory_space<vmem>>, vector<64x128xf32>
    %4 = arith.truncf %3 : vector<64x128xf32> to vector<64x128xbf16>
    %c0_2 = arith.constant 0 : index
    %c0_3 = arith.constant 0 : index
    %c0_4 = arith.constant 0 : index
    %5 = vector.load %arg3[%c0_2, %c0_3, %c0_4] : memref<1x128x128xbf16, #tpu.memory_space<vmem>>, vector<1x128x128xbf16>
    %6 = vector.shape_cast %5 : vector<1x128x128xbf16> to vector<128x128xbf16>
    %cst = arith.constant dense<0.000000e+00> : vector<64x128xf32>
    %7 = tpu.matmul %4, %6, %cst {dimension_numbers = #tpu.dot_dimension_numbers<[1], [0], [0], [1], [0, 0, 1, 1], [], []>} : vector<64x128xbf16>, vector<128x128xbf16>, vector<64x128xf32> -> vector<64x128xf32>
    %c0_5 = arith.constant 0 : index
    %c0_6 = arith.constant 0 : index
    %c0_7 = arith.constant 0 : index
    %8 = vector.load %arg5[%c0_5, %c0_6, %c0_7] : memref<1x1x128xf32, #tpu.memory_space<vmem>>, vector<1x1x128xf32>
    %9 = vector.shape_cast %8 : vector<1x1x128xf32> to vector<1x128xf32>
    %10 = vector.broadcast %9 : vector<1x128xf32> to vector<64x128xf32>
    %11 = arith.addf %7, %10 : vector<64x128xf32>
    %c0_8 = arith.constant 0 : index
    %c0_9 = arith.constant 0 : index
    %c0_10 = arith.constant 0 : index
    %12 = vector.load %arg8[%c0_8, %c0_9, %c0_10] : memref<1x64x128xf32, #tpu.memory_space<vmem>>, vector<1x64x128xf32>
    %13 = vector.shape_cast %12 : vector<1x64x128xf32> to vector<64x128xf32>
    %14 = vector.shape_cast %11 : vector<64x128xf32> to vector<1x64x128xf32>
    tpu.vector_store %arg8[%c0_8, %c0_9, %c0_10], %14 {strides = array<i32>} : memref<1x64x128xf32, #tpu.memory_space<vmem>>, vector<1x64x128xf32>,
    %c0_11 = arith.constant 0 : index
    %c0_12 = arith.constant 0 : index
    %c0_13 = arith.constant 0 : index
    %15 = vector.load %arg4[%c0_11, %c0_12, %c0_13] : memref<1x128x128xbf16, #tpu.memory_space<vmem>>, vector<1x128x128xbf16>
    %16 = vector.shape_cast %15 : vector<1x128x128xbf16> to vector<128x128xbf16>
    %c0_14 = arith.constant 0 : index
    %c0_15 = arith.constant 0 : index
    %17 = vector.load %arg2[%c0_14, %c0_15] : memref<8x1xi32, #tpu.memory_space<vmem>>, vector<8x1xi32>
    %cst_16 = arith.constant 0.000000e+00 : f32
    %18 = vector.broadcast %cst_16 : f32 to vector<8x128xf32>
    %c0_17 = arith.constant 0 : index
    %c0_18 = arith.constant 0 : index
    %c0_19 = arith.constant 0 : index
    %19 = vector.load %arg8[%c0_17, %c0_18, %c0_19] : memref<1x64x128xf32, #tpu.memory_space<vmem>>, vector<1x8x128xf32>
    %20 = vector.shape_cast %19 : vector<1x8x128xf32> to vector<8x128xf32>
    %21 = arith.truncf %18 : vector<8x128xf32> to vector<8x128xbf16>
    %cst_20 = arith.constant dense<0.000000e+00> : vector<8x128xf32>
    %22 = tpu.matmul %21, %16, %cst_20 {dimension_numbers = #tpu.dot_dimension_numbers<[1], [0], [0], [1], [0, 0, 1, 1], [], []>} : vector<8x128xbf16>, vector<128x128xbf16>, vector<8x128xf32> -> vector<8x128xf32>
    %23 = arith.addf %20, %22 : vector<8x128xf32>
    %24 = math.tanh %23 : vector<8x128xf32>
    %c0_i32_21 = arith.constant 0 : i32
    %25 = vector.broadcast %c0_i32_21 : i32 to vector<8x1xi32>
    %26 = arith.cmpi sgt, %17, %25 : vector<8x1xi32>
    %27 = vector.shape_cast %26 : vector<8x1xi1> to vector<8x1xi1>
    %28 = vector.broadcast %27 : vector<8x1xi1> to vector<8x128xi1>
    %29 = arith.select %28, %24, %18 : vector<8x128xi1>, vector<8x128xf32>
    %cst_22 = arith.constant 0.000000e+00 : f32
    %30 = vector.shape_cast %26 : vector<8x1xi1> to vector<8x1xi1>
    %31 = vector.broadcast %30 : vector<8x1xi1> to vector<8x128xi1>
    %32 = vector.broadcast %cst_22 : f32 to vector<8x128xf32>
    %33 = arith.select %31, %24, %32 : vector<8x128xi1>, vector<8x128xf32>
    %c0_23 = arith.constant 0 : index
    %c0_24 = arith.constant 0 : index
    %34 = vector.load %arg11[%c0_23, %c0_24] : memref<64x128xf32, #tpu.memory_space<vmem>>, vector<8x128xf32>
    tpu.vector_store %arg11[%c0_23, %c0_24], %33 {strides = array<i32>} : memref<64x128xf32, #tpu.memory_space<vmem>>, vector<8x128xf32>,
    %c0_25 = arith.constant 0 : index
    %c8 = arith.constant 8 : index
    %c0_26 = arith.constant 0 : index
    %35 = vector.load %arg8[%c0_25, %c8, %c0_26] : memref<1x64x128xf32, #tpu.memory_space<vmem>>, vector<1x8x128xf32>
    %36 = vector.shape_cast %35 : vector<1x8x128xf32> to vector<8x128xf32>
    %37 = arith.truncf %29 : vector<8x128xf32> to vector<8x128xbf16>
    %cst_27 = arith.constant dense<0.000000e+00> : vector<8x128xf32>
    %38 = tpu.matmul %37, %16, %cst_27 {dimension_numbers = #tpu.dot_dimension_numbers<[1], [0], [0], [1], [0, 0, 1, 1], [], []>} : vector<8x128xbf16>, vector<128x128xbf16>, vector<8x128xf32> -> vector<8x128xf32>
    %39 = arith.addf %36, %38 : vector<8x128xf32>
    %40 = math.tanh %39 : vector<8x128xf32>
    %c1_i32 = arith.constant 1 : i32
    %41 = vector.broadcast %c1_i32 : i32 to vector<8x1xi32>
    %42 = arith.cmpi sgt, %17, %41 : vector<8x1xi32>
    %43 = vector.shape_cast %42 : vector<8x1xi1> to vector<8x1xi1>
    %44 = vector.broadcast %43 : vector<8x1xi1> to vector<8x128xi1>
    %45 = arith.select %44, %40, %29 : vector<8x128xi1>, vector<8x128xf32>
    %cst_28 = arith.constant 0.000000e+00 : f32
    %46 = vector.shape_cast %42 : vector<8x1xi1> to vector<8x1xi1>
    %47 = vector.broadcast %46 : vector<8x1xi1> to vector<8x128xi1>
    %48 = vector.broadcast %cst_28 : f32 to vector<8x128xf32>
    %49 = arith.select %47, %40, %48 : vector<8x128xi1>, vector<8x128xf32>
    %c8_29 = arith.constant 8 : index
    %c0_30 = arith.constant 0 : index
    %50 = vector.load %arg11[%c8_29, %c0_30] : memref<64x128xf32, #tpu.memory_space<vmem>>, vector<8x128xf32>
    tpu.vector_store %arg11[%c8_29, %c0_30], %49 {strides = array<i32>} : memref<64x128xf32, #tpu.memory_space<vmem>>, vector<8x128xf32>,
    %c0_31 = arith.constant 0 : index
    %c16 = arith.constant 16 : index
    %c0_32 = arith.constant 0 : index
    %51 = vector.load %arg8[%c0_31, %c16, %c0_32] : memref<1x64x128xf32, #tpu.memory_space<vmem>>, vector<1x8x128xf32>
    %52 = vector.shape_cast %51 : vector<1x8x128xf32> to vector<8x128xf32>
    %53 = arith.truncf %45 : vector<8x128xf32> to vector<8x128xbf16>
    %cst_33 = arith.constant dense<0.000000e+00> : vector<8x128xf32>
    %54 = tpu.matmul %53, %16, %cst_33 {dimension_numbers = #tpu.dot_dimension_numbers<[1], [0], [0], [1], [0, 0, 1, 1], [], []>} : vector<8x128xbf16>, vector<128x128xbf16>, vector<8x128xf32> -> vector<8x128xf32>
    %55 = arith.addf %52, %54 : vector<8x128xf32>
    %56 = math.tanh %55 : vector<8x128xf32>
    %c2_i32 = arith.constant 2 : i32
    %57 = vector.broadcast %c2_i32 : i32 to vector<8x1xi32>
    %58 = arith.cmpi sgt, %17, %57 : vector<8x1xi32>
    %59 = vector.shape_cast %58 : vector<8x1xi1> to vector<8x1xi1>
    %60 = vector.broadcast %59 : vector<8x1xi1> to vector<8x128xi1>
    %61 = arith.select %60, %56, %45 : vector<8x128xi1>, vector<8x128xf32>
    %cst_34 = arith.constant 0.000000e+00 : f32
    %62 = vector.shape_cast %58 : vector<8x1xi1> to vector<8x1xi1>
    %63 = vector.broadcast %62 : vector<8x1xi1> to vector<8x128xi1>
    %64 = vector.broadcast %cst_34 : f32 to vector<8x128xf32>
    %65 = arith.select %63, %56, %64 : vector<8x128xi1>, vector<8x128xf32>
    %c16_35 = arith.constant 16 : index
    %c0_36 = arith.constant 0 : index
    %66 = vector.load %arg11[%c16_35, %c0_36] : memref<64x128xf32, #tpu.memory_space<vmem>>, vector<8x128xf32>
    tpu.vector_store %arg11[%c16_35, %c0_36], %65 {strides = array<i32>} : memref<64x128xf32, #tpu.memory_space<vmem>>, vector<8x128xf32>,
    %c0_37 = arith.constant 0 : index
    %c24 = arith.constant 24 : index
    %c0_38 = arith.constant 0 : index
    %67 = vector.load %arg8[%c0_37, %c24, %c0_38] : memref<1x64x128xf32, #tpu.memory_space<vmem>>, vector<1x8x128xf32>
    %68 = vector.shape_cast %67 : vector<1x8x128xf32> to vector<8x128xf32>
    %69 = arith.truncf %61 : vector<8x128xf32> to vector<8x128xbf16>
    %cst_39 = arith.constant dense<0.000000e+00> : vector<8x128xf32>
    %70 = tpu.matmul %69, %16, %cst_39 {dimension_numbers = #tpu.dot_dimension_numbers<[1], [0], [0], [1], [0, 0, 1, 1], [], []>} : vector<8x128xbf16>, vector<128x128xbf16>, vector<8x128xf32> -> vector<8x128xf32>
    %71 = arith.addf %68, %70 : vector<8x128xf32>
    %72 = math.tanh %71 : vector<8x128xf32>
    %c3_i32 = arith.constant 3 : i32
    %73 = vector.broadcast %c3_i32 : i32 to vector<8x1xi32>
    %74 = arith.cmpi sgt, %17, %73 : vector<8x1xi32>
    %75 = vector.shape_cast %74 : vector<8x1xi1> to vector<8x1xi1>
    %76 = vector.broadcast %75 : vector<8x1xi1> to vector<8x128xi1>
    %77 = arith.select %76, %72, %61 : vector<8x128xi1>, vector<8x128xf32>
    %cst_40 = arith.constant 0.000000e+00 : f32
    %78 = vector.shape_cast %74 : vector<8x1xi1> to vector<8x1xi1>
    %79 = vector.broadcast %78 : vector<8x1xi1> to vector<8x128xi1>
    %80 = vector.broadcast %cst_40 : f32 to vector<8x128xf32>
    %81 = arith.select %79, %72, %80 : vector<8x128xi1>, vector<8x128xf32>
    %c24_41 = arith.constant 24 : index
    %c0_42 = arith.constant 0 : index
    %82 = vector.load %arg11[%c24_41, %c0_42] : memref<64x128xf32, #tpu.memory_space<vmem>>, vector<8x128xf32>
    tpu.vector_store %arg11[%c24_41, %c0_42], %81 {strides = array<i32>} : memref<64x128xf32, #tpu.memory_space<vmem>>, vector<8x128xf32>,
    %c0_43 = arith.constant 0 : index
    %c32 = arith.constant 32 : index
    %c0_44 = arith.constant 0 : index
    %83 = vector.load %arg8[%c0_43, %c32, %c0_44] : memref<1x64x128xf32, #tpu.memory_space<vmem>>, vector<1x8x128xf32>
    %84 = vector.shape_cast %83 : vector<1x8x128xf32> to vector<8x128xf32>
    %85 = arith.truncf %77 : vector<8x128xf32> to vector<8x128xbf16>
    %cst_45 = arith.constant dense<0.000000e+00> : vector<8x128xf32>
    %86 = tpu.matmul %85, %16, %cst_45 {dimension_numbers = #tpu.dot_dimension_numbers<[1], [0], [0], [1], [0, 0, 1, 1], [], []>} : vector<8x128xbf16>, vector<128x128xbf16>, vector<8x128xf32> -> vector<8x128xf32>
    %87 = arith.addf %84, %86 : vector<8x128xf32>
    %88 = math.tanh %87 : vector<8x128xf32>
    %c4_i32 = arith.constant 4 : i32
    %89 = vector.broadcast %c4_i32 : i32 to vector<8x1xi32>
    %90 = arith.cmpi sgt, %17, %89 : vector<8x1xi32>
    %91 = vector.shape_cast %90 : vector<8x1xi1> to vector<8x1xi1>
    %92 = vector.broadcast %91 : vector<8x1xi1> to vector<8x128xi1>
    %93 = arith.select %92, %88, %77 : vector<8x128xi1>, vector<8x128xf32>
    %cst_46 = arith.constant 0.000000e+00 : f32
    %94 = vector.shape_cast %90 : vector<8x1xi1> to vector<8x1xi1>
    %95 = vector.broadcast %94 : vector<8x1xi1> to vector<8x128xi1>
    %96 = vector.broadcast %cst_46 : f32 to vector<8x128xf32>
    %97 = arith.select %95, %88, %96 : vector<8x128xi1>, vector<8x128xf32>
    %c32_47 = arith.constant 32 : index
    %c0_48 = arith.constant 0 : index
    %98 = vector.load %arg11[%c32_47, %c0_48] : memref<64x128xf32, #tpu.memory_space<vmem>>, vector<8x128xf32>
    tpu.vector_store %arg11[%c32_47, %c0_48], %97 {strides = array<i32>} : memref<64x128xf32, #tpu.memory_space<vmem>>, vector<8x128xf32>,
    %c0_49 = arith.constant 0 : index
    %c40 = arith.constant 40 : index
    %c0_50 = arith.constant 0 : index
    %99 = vector.load %arg8[%c0_49, %c40, %c0_50] : memref<1x64x128xf32, #tpu.memory_space<vmem>>, vector<1x8x128xf32>
    %100 = vector.shape_cast %99 : vector<1x8x128xf32> to vector<8x128xf32>
    %101 = arith.truncf %93 : vector<8x128xf32> to vector<8x128xbf16>
    %cst_51 = arith.constant dense<0.000000e+00> : vector<8x128xf32>
    %102 = tpu.matmul %101, %16, %cst_51 {dimension_numbers = #tpu.dot_dimension_numbers<[1], [0], [0], [1], [0, 0, 1, 1], [], []>} : vector<8x128xbf16>, vector<128x128xbf16>, vector<8x128xf32> -> vector<8x128xf32>
    %103 = arith.addf %100, %102 : vector<8x128xf32>
    %104 = math.tanh %103 : vector<8x128xf32>
    %c5_i32 = arith.constant 5 : i32
    %105 = vector.broadcast %c5_i32 : i32 to vector<8x1xi32>
    %106 = arith.cmpi sgt, %17, %105 : vector<8x1xi32>
    %107 = vector.shape_cast %106 : vector<8x1xi1> to vector<8x1xi1>
    %108 = vector.broadcast %107 : vector<8x1xi1> to vector<8x128xi1>
    %109 = arith.select %108, %104, %93 : vector<8x128xi1>, vector<8x128xf32>
    %cst_52 = arith.constant 0.000000e+00 : f32
    %110 = vector.shape_cast %106 : vector<8x1xi1> to vector<8x1xi1>
    %111 = vector.broadcast %110 : vector<8x1xi1> to vector<8x128xi1>
    %112 = vector.broadcast %cst_52 : f32 to vector<8x128xf32>
    %113 = arith.select %111, %104, %112 : vector<8x128xi1>, vector<8x128xf32>
    %c40_53 = arith.constant 40 : index
    %c0_54 = arith.constant 0 : index
    %114 = vector.load %arg11[%c40_53, %c0_54] : memref<64x128xf32, #tpu.memory_space<vmem>>, vector<8x128xf32>
    tpu.vector_store %arg11[%c40_53, %c0_54], %113 {strides = array<i32>} : memref<64x128xf32, #tpu.memory_space<vmem>>, vector<8x128xf32>,
    %c0_55 = arith.constant 0 : index
    %c48 = arith.constant 48 : index
    %c0_56 = arith.constant 0 : index
    %115 = vector.load %arg8[%c0_55, %c48, %c0_56] : memref<1x64x128xf32, #tpu.memory_space<vmem>>, vector<1x8x128xf32>
    %116 = vector.shape_cast %115 : vector<1x8x128xf32> to vector<8x128xf32>
    %117 = arith.truncf %109 : vector<8x128xf32> to vector<8x128xbf16>
    %cst_57 = arith.constant dense<0.000000e+00> : vector<8x128xf32>
    %118 = tpu.matmul %117, %16, %cst_57 {dimension_numbers = #tpu.dot_dimension_numbers<[1], [0], [0], [1], [0, 0, 1, 1], [], []>} : vector<8x128xbf16>, vector<128x128xbf16>, vector<8x128xf32> -> vector<8x128xf32>
    %119 = arith.addf %116, %118 : vector<8x128xf32>
    %120 = math.tanh %119 : vector<8x128xf32>
    %c6_i32 = arith.constant 6 : i32
    %121 = vector.broadcast %c6_i32 : i32 to vector<8x1xi32>
    %122 = arith.cmpi sgt, %17, %121 : vector<8x1xi32>
    %123 = vector.shape_cast %122 : vector<8x1xi1> to vector<8x1xi1>
    %124 = vector.broadcast %123 : vector<8x1xi1> to vector<8x128xi1>
    %125 = arith.select %124, %120, %109 : vector<8x128xi1>, vector<8x128xf32>
    %cst_58 = arith.constant 0.000000e+00 : f32
    %126 = vector.shape_cast %122 : vector<8x1xi1> to vector<8x1xi1>
    %127 = vector.broadcast %126 : vector<8x1xi1> to vector<8x128xi1>
    %128 = vector.broadcast %cst_58 : f32 to vector<8x128xf32>
    %129 = arith.select %127, %120, %128 : vector<8x128xi1>, vector<8x128xf32>
    %c48_59 = arith.constant 48 : index
    %c0_60 = arith.constant 0 : index
    %130 = vector.load %arg11[%c48_59, %c0_60] : memref<64x128xf32, #tpu.memory_space<vmem>>, vector<8x128xf32>
    tpu.vector_store %arg11[%c48_59, %c0_60], %129 {strides = array<i32>} : memref<64x128xf32, #tpu.memory_space<vmem>>, vector<8x128xf32>,
    %c0_61 = arith.constant 0 : index
    %c56 = arith.constant 56 : index
    %c0_62 = arith.constant 0 : index
    %131 = vector.load %arg8[%c0_61, %c56, %c0_62] : memref<1x64x128xf32, #tpu.memory_space<vmem>>, vector<1x8x128xf32>
    %132 = vector.shape_cast %131 : vector<1x8x128xf32> to vector<8x128xf32>
    %133 = arith.truncf %125 : vector<8x128xf32> to vector<8x128xbf16>
    %cst_63 = arith.constant dense<0.000000e+00> : vector<8x128xf32>
    %134 = tpu.matmul %133, %16, %cst_63 {dimension_numbers = #tpu.dot_dimension_numbers<[1], [0], [0], [1], [0, 0, 1, 1], [], []>} : vector<8x128xbf16>, vector<128x128xbf16>, vector<8x128xf32> -> vector<8x128xf32>
    %135 = arith.addf %132, %134 : vector<8x128xf32>
    %136 = math.tanh %135 : vector<8x128xf32>
    %c7_i32 = arith.constant 7 : i32
    %137 = vector.broadcast %c7_i32 : i32 to vector<8x1xi32>
    %138 = arith.cmpi sgt, %17, %137 : vector<8x1xi32>
    %139 = vector.shape_cast %138 : vector<8x1xi1> to vector<8x1xi1>
    %140 = vector.broadcast %139 : vector<8x1xi1> to vector<8x128xi1>
    %141 = arith.select %140, %136, %125 : vector<8x128xi1>, vector<8x128xf32>
    %cst_64 = arith.constant 0.000000e+00 : f32
    %142 = vector.shape_cast %138 : vector<8x1xi1> to vector<8x1xi1>
    %143 = vector.broadcast %142 : vector<8x1xi1> to vector<8x128xi1>
    %144 = vector.broadcast %cst_64 : f32 to vector<8x128xf32>
    %145 = arith.select %143, %136, %144 : vector<8x128xi1>, vector<8x128xf32>
    %c56_65 = arith.constant 56 : index
    %c0_66 = arith.constant 0 : index
    %146 = vector.load %arg11[%c56_65, %c0_66] : memref<64x128xf32, #tpu.memory_space<vmem>>, vector<8x128xf32>
    tpu.vector_store %arg11[%c56_65, %c0_66], %145 {strides = array<i32>} : memref<64x128xf32, #tpu.memory_space<vmem>>, vector<8x128xf32>,
    %c0_67 = arith.constant 0 : index
    %c0_68 = arith.constant 0 : index
    %147 = vector.load %arg11[%c0_67, %c0_68] : memref<64x128xf32, #tpu.memory_space<vmem>>, vector<64x128xf32>
    %c0_69 = arith.constant 0 : index
    %c0_70 = arith.constant 0 : index
    %c0_71 = arith.constant 0 : index
    %148 = vector.load %arg8[%c0_69, %c0_70, %c0_71] : memref<1x64x128xf32, #tpu.memory_space<vmem>>, vector<1x64x128xf32>
    %149 = vector.shape_cast %148 : vector<1x64x128xf32> to vector<64x128xf32>
    %150 = vector.shape_cast %147 : vector<64x128xf32> to vector<1x64x128xf32>
    tpu.vector_store %arg8[%c0_69, %c0_70, %c0_71], %150 {strides = array<i32>} : memref<1x64x128xf32, #tpu.memory_space<vmem>>, vector<1x64x128xf32>,
    %c1_i32_72 = arith.constant 1 : i32
    %151 = arith.cmpi eq, %arg0, %c1_i32_72 : i32
    %152 = arith.extui %151 : i1 to i32
    %c0_i32_73 = arith.constant 0 : i32
    %153 = arith.cmpi ne, %152, %c0_i32_73 : i32
    scf.if %153 {
      %c0_74 = arith.constant 0 : index
      %c0_75 = arith.constant 0 : index
      %154 = vector.load %arg9[%c0_74, %c0_75] : memref<8x128xf32, #tpu.memory_space<vmem>>, vector<8x128xf32>
      tpu.vector_store %arg9[%c0_74, %c0_75], %141 {strides = array<i32>} : memref<8x128xf32, #tpu.memory_space<vmem>>, vector<8x128xf32>,
      %155 = arith.truncf %141 : vector<8x128xf32> to vector<8x128xbf16>
      %c0_76 = arith.constant 0 : index
      %c0_77 = arith.constant 0 : index
      %156 = vector.load %arg6[%c0_76, %c0_77] : memref<128x128xbf16, #tpu.memory_space<vmem>>, vector<128x128xbf16>
      %cst_78 = arith.constant dense<0.000000e+00> : vector<8x128xf32>
      %157 = tpu.matmul %155, %156, %cst_78 {dimension_numbers = #tpu.dot_dimension_numbers<[1], [0], [0], [1], [0, 0, 1, 1], [], []>} : vector<8x128xbf16>, vector<128x128xbf16>, vector<8x128xf32> -> vector<8x128xf32>
      %c0_79 = arith.constant 0 : index
      %c0_80 = arith.constant 0 : index
      %158 = vector.load %arg7[%c0_79, %c0_80] : memref<1x128xf32, #tpu.memory_space<vmem>>, vector<1x128xf32>
      %159 = vector.broadcast %158 : vector<1x128xf32> to vector<8x128xf32>
      %160 = arith.addf %157, %159 : vector<8x128xf32>
      %c0_81 = arith.constant 0 : index
      %c0_82 = arith.constant 0 : index
      %161 = vector.load %arg10[%c0_81, %c0_82] : memref<8x128xf32, #tpu.memory_space<vmem>>, vector<8x128xf32>
      tpu.vector_store %arg10[%c0_81, %c0_82], %160 {strides = array<i32>} : memref<8x128xf32, #tpu.memory_space<vmem>>, vector<8x128xf32>,
    } else {
    }
    return
  }
  func.func @transform_0(%arg0: i32) -> (i32, i32) {
    %c0_i32 = arith.constant 0 : i32
    %c0_i32_0 = arith.constant 0 : i32
    %c0_i32_1 = arith.constant 0 : i32
    return %c0_i32, %c0_i32_0 : i32, i32
  }
  func.func @transform_1(%arg0: i32) -> (i32, i32) {
    %c0_i32 = arith.constant 0 : i32
    %c0_i32_0 = arith.constant 0 : i32
    %c0_i32_1 = arith.constant 0 : i32
    return %c0_i32, %c0_i32_0 : i32, i32
  }
  func.func @transform_2(%arg0: i32) -> (i32, i32, i32) {
    %c0_i32 = arith.constant 0 : i32
    %c0_i32_0 = arith.constant 0 : i32
    %c0_i32_1 = arith.constant 0 : i32
    return %arg0, %c0_i32, %c0_i32_0 : i32, i32, i32
  }
  func.func @transform_3(%arg0: i32) -> (i32, i32, i32) {
    %c0_i32 = arith.constant 0 : i32
    %c0_i32_0 = arith.constant 0 : i32
    %c0_i32_1 = arith.constant 0 : i32
    return %arg0, %c0_i32, %c0_i32_0 : i32, i32, i32
  }
  func.func @transform_4(%arg0: i32) -> (i32, i32, i32) {
    %c0_i32 = arith.constant 0 : i32
    %c0_i32_0 = arith.constant 0 : i32
    %c0_i32_1 = arith.constant 0 : i32
    return %arg0, %c0_i32, %c0_i32_0 : i32, i32, i32
  }
  func.func @transform_5(%arg0: i32) -> (i32, i32) {
    %c0_i32 = arith.constant 0 : i32
    %c0_i32_0 = arith.constant 0 : i32
    %c0_i32_1 = arith.constant 0 : i32
    return %c0_i32, %c0_i32_0 : i32, i32
  }
  func.func @transform_6(%arg0: i32) -> (i32, i32) {
    %c0_i32 = arith.constant 0 : i32
    %c0_i32_0 = arith.constant 0 : i32
    %c0_i32_1 = arith.constant 0 : i32
    return %c0_i32, %c0_i32_0 : i32, i32
  }
  func.func @transform_7(%arg0: i32) -> (i32, i32, i32) {
    %c0_i32 = arith.constant 0 : i32
    %c0_i32_0 = arith.constant 0 : i32
    %c0_i32_1 = arith.constant 0 : i32
    return %arg0, %c0_i32, %c0_i32_0 : i32, i32, i32
  }
  func.func @transform_8(%arg0: i32) -> (i32, i32) {
    %c0_i32 = arith.constant 0 : i32
    %c0_i32_0 = arith.constant 0 : i32
    %c0_i32_1 = arith.constant 0 : i32
    return %c0_i32, %c0_i32_0 : i32, i32
  }
  func.func @transform_9(%arg0: i32) -> (i32, i32) {
    %c0_i32 = arith.constant 0 : i32
    %c0_i32_0 = arith.constant 0 : i32
    %c0_i32_1 = arith.constant 0 : i32
    return %c0_i32, %c0_i32_0 : i32, i32
  }
}

</mosaic_0001>

<bundles_post_ra>
// kernel: tpu_custom_call.1
= control target key start
LH: loop header
LB: loop body
LE: loop exit
PB: predicated region body
PF: predicated region fallthrough
CT: control target
= control target key end

     0   :  { %s2753_s0 = inlined_call_operand.hbm [shape: f32[64,128], index: 0, kind: input, shape index: {}]   ;;  %s2754_s1 = inlined_call_operand.vmem [shape: s32[8,1], index: 1, kind: input, shape index: {}]   ;;  %s2755_s2 = inlined_call_operand.hbm [shape: bf16[2,128,128], index: 2, kind: input, shape index: {}]   ;;  %s2756_s3 = inlined_call_operand.hbm [shape: bf16[2,128,128], index: 3, kind: input, shape index: {}]   ;;  %s2757_s4 = inlined_call_operand.vmem [shape: f32[2,1,128], index: 4, kind: input, shape index: {}]   ;;  %s2758_s5 = inlined_call_operand.hbm [shape: bf16[128,128], index: 5, kind: input, shape index: {}]   ;;  %s2759_s6 = inlined_call_operand.vmem [shape: f32[1,128], index: 6, kind: input, shape index: {}]   ;;  %s2760_s7 = inlined_call_operand.hbm [shape: f32[2,64,128], index: 7, kind: output, shape index: {0}]   ;;  %s2761_s8 = inlined_call_operand.hbm [shape: f32[8,128], index: 8, kind: output, shape index: {1}]   ;;  %s2762_s9 = inlined_call_operand.hbm [shape: f32[8,128], index: 9, kind: output, shape index: {2}]  }
   0x1   :  { %2776 = sst [smem:[#allocation24_spill]] %s2755_s2 }
   0x2   :  { %15 = vsyncpa [#allocation4], 0 }
   0x3   :  { %16 = vsyncpa [#allocation7], 0 }
   0x4   :  { %18 = vsyncpa [#allocation7 + $0x1], 0 }
   0x5   :  { %19 = vsyncpa [#allocation10], 0 }
   0x6   :  { %20 = vsyncpa [#allocation5], 0 }
   0x7   :  { %22 = vsyncpa [#allocation5 + $0x1], 0 }
   0x8   :  { %23 = vsyncpa [#allocation13], 0  ;;  %s2205_s30 = smov 0   ;;  %s2207_s10 = smov 0  }
   0x9   :  { %s2209_s11 = smov 0   ;;  %s2211_s12 = smov 0  }
   0xa LB: > { %2777 = sst [smem:[#allocation20_spill]] %s2131_s11  ;;  %s2226_s13 = sadd.s32 1, %s2135_s12   ;;  %s2135_s12 = sphi %s2211_s12, %s2807_s12   ;;  %s2131_s11 = sphi %s2209_s11, %s2809_s11   ;;  %s2127_s10 = sphi %s2207_s10, %s2811_s10   ;;  %s2123_s30 = sphi %s2205_s30, %s2810_s30  }
   0xb   : > { %2778 = sst [smem:[#allocation21_spill]] %s2135_s12  ;;  %s78_s14 = sadd.s32 1, %s2131_s11 }
   0xc   : > { %2779 = sst [smem:[#allocation22_spill]] %s2226_s13  ;;  %s75_s15 = ssub.s32 %s2135_s12, %s2226_s13 }
   0xd   : > { %p85_p0 = scmp.ne.s32.totalorder %s2131_s11, %s2127_s10  ;;  %p76_p1 = scmp.eq.s32.totalorder %s75_s15, 0 }
   0xe   : > { %p86_p2 = scmp.eq.s32.totalorder %s2135_s12, 0  ;;  %p1806_p5 = scmp.lt.s32.totalorder %s2135_s12, 2 }
   0xf   : > { %s2235_s16 = scalar_select %p76_p1, %s2131_s11, %s78_s14  }
  0x10   : > { %p87_p3 = por %p86_p2, %p85_p0  ;;  %s309_s17 = sand.u32 1, %s2135_s12  }
  0x11   : > { %2780 = sst [smem:[#allocation23_spill]] %s2235_s16  ;;  %s311_s18 = sand.u32 1, %s2131_s11  }
  0x12   : > { %s2244_s19 = sshll.u32 %s311_s18, 6  ;;  %s1464_s20 = sshll.u32 %s2135_s12, 10 }
  0x13   : > { %s2781_s2 = sld [smem:[#allocation24_spill]]  ;;  %s313_s24 = scalar_lea.vmem [#allocation6], %s2244_s19 }
  0x14   : > { %s320_s25 = sshll.u32 %s313_s24, 4  ;;  %p2255_p6 = pnand %p1806_p5, %p87_p3  ;;  %s2259_s25 = int_to_ptr.vmem [resolvable:$true] %s320_s25 }
  0x15   : > { %s2261_s27 = scalar_lea.sflag [#allocation7], %s309_s17 }
  0x16   : > { %p1905_p8 = pneg %p2255_p6 }
  0x19   : > { %s2252_s23 = scalar_lea.hbm %s2781_s2, %s1464_s20  ;;  %s1908_s15 = scalar_lea.hbm %s2781_s2, 2048 }
  0x1a   : > { %s1903_s28 = scalar_lea.hbm %s2252_s23, 1024  ;;  %p1909_p11 = scmp.lt.s32.totalorder %s2252_s23, %s2781_s2 }
  0x1b   : > { %p1904_p7 = scmp.ne.s32.totalorder %s2252_s23, %s1903_s28  ;;  %p1910_p12 = scmp.lt.s32.totalorder %s1908_s15, %s1903_s28 }
  0x1d   : > { %p1906_p9 = pnand %p1905_p8, %p1904_p7  ;;  %p1911_p13 = por %p1910_p12, %p1909_p11 }
  0x1f   : > { %p1907_p10 = pneg %p1906_p9 }
  0x21   : > { %p1912_p1 = pnand %p1911_p13, %p1907_p10 }
  0x23   : > { %1915 = shalt.err (!%p1912_p1)
}
  0x24   : > { %s1916_s17 = scalar_lea.vmem %s2259_s25, 1024  ;;  %s2137_s22 = smov [#allocation6]  }
  0x25   : > { %p1917_p2 = scmp.ne.s32.totalorder %s2259_s25, %s1916_s17  ;;  %s1921_s24 = sshll.u32 %s2137_s22, 4  ;;  %s1922_s24 = int_to_ptr.vmem [resolvable:$false] %s1921_s24 }
  0x26   : > { %s1923_s29 = scalar_lea.vmem %s1922_s24, 2048  ;;  %p1924_p7 = scmp.lt.s32.totalorder %s2259_s25, %s1922_s24 }
  0x27   : > { %p1919_p3 = pnand %p1917_p2, %p1905_p8  ;;  %p1925_p9 = scmp.lt.s32.totalorder %s1923_s29, %s1916_s17 }
  0x29   : > { %p1920_p5 = pneg %p1919_p3  ;;  %p1926_p4 = por %p1925_p9, %p1924_p7 }
  0x2b   : > { %p1927_p11 = pnand %p1926_p4, %p1920_p5 }
  0x2d   : > { %1930 = shalt.err (!%p1927_p11)
}
  0x2e   : > { %s2763_s28 = smov 64   ;;  %s2765_s14 = smov 4  }
  0x2f   : > { %1796 = dma.hbm_to_vmem [thread:$0]  (!%p2255_p6), %s2252_s23, 1024, %s2259_s25, %s2261_s27, %s2763_s28, %s2763_s28, %s2765_s14  }
  0x30   : > { %s2296_s21 = scalar_lea.hbm %s2756_s3, %s1464_s20  ;;  %s334_s17 = scalar_lea.vmem [#allocation8], %s2244_s19 }
  0x31   : > { %s341_s22 = sshll.u32 %s334_s17, 4  ;;  %s2300_s24 = sadd.s32 4294967295, %s2135_s12   ;;  %s2329_s22 = int_to_ptr.vmem [resolvable:$true] %s341_s22 }
  0x32   : > { %s1407_s29 = sadd.s32 4294967294, %s2135_s12   ;;  %p91_p4 = scmp.ne.s32.totalorder %s2127_s10, %s2123_s30 }
  0x33   : > { %p2771_p10 = scmp.eq.s32.totalorder %s2300_s24, 0  ;;  %p2770_p12 = scmp.eq.s32.totalorder %s2300_s24, 1 }
  0x34   : > { %p215_p13 = scmp.eq.s32.totalorder %s1407_s29, 1  ;;  %p1408_p2 = scmp.ge.s32.totalorder %s2135_s12, 1 }
  0x35   : > { %p2309_p1 = por %p2771_p10, %p91_p4  ;;  %p2319_p3 = por %p2770_p12, %p85_p0 }
  0x36   : > { %p2323_p5 = por %p215_p13, %p91_p4  ;;  %p264_p7 = scmp.lt.s32.totalorder %s2135_s12, 3 }
  0x37   : > { %s2783_s23 = scalar_select %p2309_p1, 1, 0 }
  0x38   : > { %s2784_s19 = scalar_select %p2319_p3, 1, 0 }
  0x39   : > { %s2785_s20 = scalar_select %p2323_p5, 1, 0 }
  0x3a   : > { %p2331_p11 = pnand %p1408_p2, %p264_p7  ;;  %s2140_s15 = smov [#allocation3]  }
  0x3b   : > { %s276_s18 = sshll.u32 %s2140_s15, 4  ;;  %s2141_s17 = smov [#allocation9]   ;;  %s2335_s18 = int_to_ptr.vmem [resolvable:$true] %s276_s18 }
  0x3c   : > { %s2786_s25 = scalar_select %p2331_p11, 1, 0 }
  0x3d   : > { %p1786_p0 = pneg %p2331_p11  ;;  %s292_s29 = sshll.u32 %s2141_s17, 4  ;;  %s2345_s29 = int_to_ptr.vmem [resolvable:$true] %s292_s29 }
  0x3e   : > { %s1931_s14 = scalar_lea.hbm %s2296_s21, 1024  ;;  %s1936_s16 = scalar_lea.hbm %s2756_s3, 2048 }
  0x3f   : > { %p2341_p4 = pnand %p1786_p0, %p2771_p10  ;;  %p1932_p13 = scmp.ne.s32.totalorder %s2296_s21, %s1931_s14 }
  0x40   : > { %p1937_p12 = scmp.lt.s32.totalorder %s2296_s21, %s2756_s3  ;;  %p1938_p0 = scmp.lt.s32.totalorder %s1936_s16, %s1931_s14 }
  0x41   : > { %p1934_p2 = pnand %p1932_p13, %p1905_p8 }
  0x42   : > { %p1939_p9 = por %p1938_p0, %p1937_p12 }
  0x43   : > { %p1935_p7 = pneg %p1934_p2 }
  0x45   : > { %p1940_p10 = pnand %p1939_p9, %p1935_p7 }
  0x47   : > { %1943 = shalt.err (!%p1940_p10)
}
  0x48   : > { %s1944_s17 = scalar_lea.vmem %s2329_s22, 1024  ;;  %s2142_s2 = smov [#allocation8]  }
  0x49   : > { %p1945_p5 = scmp.ne.s32.totalorder %s2329_s22, %s1944_s17  ;;  %s1949_s15 = sshll.u32 %s2142_s2, 4  ;;  %s1950_s15 = int_to_ptr.vmem [resolvable:$false] %s1949_s15 }
  0x4a   : > { %s1951_s12 = scalar_lea.vmem %s1950_s15, 2048  ;;  %p1952_p3 = scmp.lt.s32.totalorder %s2329_s22, %s1950_s15 }
  0x4b   : > { %p1947_p13 = pnand %p1945_p5, %p1905_p8  ;;  %p1953_p1 = scmp.lt.s32.totalorder %s1951_s12, %s1944_s17 }
  0x4d   : > { %p1948_p2 = pneg %p1947_p13  ;;  %p1954_p11 = por %p1953_p1, %p1952_p3 }
  0x4f   : > { %p1955_p12 = pnand %p1954_p11, %p1948_p2 }
  0x51   : > { %1958 = shalt.err (!%p1955_p12)
}
  0x52   : > { %s2788_s11 = smov 4   ;;  %s2789_s13 = smov 64  }
  0x53   : > { %1799 = dma.hbm_to_vmem [thread:$0]  (!%p2255_p6), %s2296_s21, 1024, %s2329_s22, %s2261_s27, %s2789_s13, %s2789_s13, %s2788_s11  }
  0x54   : > { %p1961_p8 = pneg %p2341_p4  ;;  %s1970_s12 = scalar_lea.vmem %s2335_s18, 1024 }
  0x55   : > { %p1971_p10 = scmp.ne.s32.totalorder %s2335_s18, %s1970_s12  ;;  %p1978_p5 = scmp.lt.s32.totalorder %s2335_s18, %s2335_s18 }
  0x56   : > { %p1979_p9 = scmp.lt.s32.totalorder %s1970_s12, %s1970_s12 }
  0x57   : > { %p1973_p1 = pnand %p1971_p10, %p1961_p8 }
  0x58   : > { %p1980_p11 = por %p1979_p9, %p1978_p5 }
  0x59   : > { %p1974_p3 = pneg %p1973_p1 }
  0x5b   : > { %p1981_p7 = pnand %p1980_p11, %p1974_p3 }
  0x5d   : > { %1984 = shalt.err (!%p1981_p7)
}
  0x5e   : > { %s2143_s16 = smov 128   ;;  %s2144_s26 = smov 8  }
  0x5f   : > { %1789 = dma.hbm_to_vmem [thread:$0]  (!%p2341_p4), %s2753_s0, 1024, %s2335_s18, [#allocation4], %s2143_s16, %s2143_s16, %s2144_s26  }
  0x60   : > { %s1996_s21 = scalar_lea.vmem %s2345_s29, 1024  ;;  %p2004_p2 = scmp.lt.s32.totalorder %s2345_s29, %s2345_s29 }
  0x61   : > { %p1997_p6 = scmp.ne.s32.totalorder %s2345_s29, %s1996_s21  ;;  %p2005_p12 = scmp.lt.s32.totalorder %s1996_s21, %s1996_s21 }
  0x63   : > { %p1999_p0 = pnand %p1997_p6, %p1961_p8  ;;  %p2006_p10 = por %p2005_p12, %p2004_p2 }
  0x65   : > { %p2000_p13 = pneg %p1999_p0 }
  0x67   : > { %p2007_p1 = pnand %p2006_p10, %p2000_p13 }
  0x69   : > { %2010 = shalt.err (!%p2007_p1)
}
  0x6a   : > { %1792 = dma.hbm_to_vmem [thread:$0]  (!%p2341_p4), %s2758_s5, 1024, %s2345_s29, [#allocation10], %s2789_s13, %s2789_s13, %s2788_s11  }
  0x6b   : > { %p2790_p3 = scmp.ne.s32.totalorder %s2786_s25, 0 }
  0x6c   : > { %p2791_p8 = scmp.eq.s32.totalorder (!%p2790_p3), %s2300_s24, 0 }
  0x6d   : > { %359 = sbr.rel (%p2790_p3) target bundleno = 2156 (0x86c), region = 48 }
  0x72   : > { %2102 = dma.done.wait (%p2791_p8), [#allocation4], 1024   ;;  %p2792_p5 = pmov %p2791_p8 }
  0x73   : > { %s365_s28 = sand.u32 1, %s2300_s24   ;;  %s367_s17 = sand.u32 1, %s2127_s10  }
  0x74   : > { %2104 = vsyncadd (%p2792_p5), [#allocation4], 4294966272  ;;  %s1420_s2 = sshll.u32 %s367_s17, 6  ;;  %s366_s15 = scalar_lea.sflag [#allocation7], %s365_s28 }
  0x75   : > { %s2414_s12 = scalar_lea.vmem [#allocation6], %s1420_s2  ;;  %p2793_p4 = scmp.ne.s32.totalorder %s2783_s23, 0 }
  0x77   : > { %2106 = dma.done.wait (%p2793_p4), %s366_s15, 2048  }
  0x78   : > { %2108 = vsyncadd (%p2793_p4), %s366_s15, 4294965248  ;;  %s2420_s25 = scalar_lea.vmem [#allocation8], %s1420_s2  ;;  %p2794_p9 = pmov %p2792_p5 }
  0x79   : > { %p2795_p11 = pmov %p2792_p5 }
  0x7a   : > { %2110 = dma.done.wait (%p2794_p9), [#allocation10], 1024  }
  0x7b   : > { %2112 = vsyncadd (%p2795_p11), [#allocation10], 4294966272  ;;  %p425_p7 = scmp.lt.s32.totalorder %s2300_s24, 1  ;;  %s2434_s23 = scalar_lea.vmem [#allocation11], %s1420_s2 }
  0x7c   : > { %p2796_p6 = scmp.ne.s32.totalorder %s2300_s24, 0 }
  0x7d   : > { %s2428_s29 = scalar_select %p425_p7, %s2300_s24, 1 }
  0x7e   : > { %432 = sbr.rel (%p2796_p6) target bundleno = 136 (0x88), region = 68 }
  0x7f   : > { %s427_s16 = scalar_lea.vmem %s2757_s4, %s2428_s29 }
  0x83   : > { %v433_v0 = vld [vmem:[#allocation3] sm:$0xff]  ;;  %v434_v1 = vld [vmem:[#allocation3 + $0x8] sm:$0xff]  ;;  %v435_v2 = vld [vmem:[#allocation3 + $0x10] sm:$0xff] }
  0x84   : > { %441 = vst [vmem:[#allocation2 + $0x30] sm:$0xff] %v433_v0  ;;  %442 = vst [vmem:[#allocation2] sm:$0xff] %v434_v1  ;;  %v436_v3 = vld [vmem:[#allocation3 + $0x18] sm:$0xff]  ;;  %v437_v4 = vld [vmem:[#allocation3 + $0x20] sm:$0xff] }
  0x85   : > { %443 = vst [vmem:[#allocation2 + $0x18] sm:$0xff] %v435_v2  ;;  %v438_v5 = vld [vmem:[#allocation3 + $0x28] sm:$0xff]  ;;  %444 = vst [vmem:[#allocation2 + $0x10] sm:$0xff] %v436_v3  ;;  %v439_v6 = vld [vmem:[#allocation3 + $0x30] sm:$0xff] }
  0x86   : > { %445 = vst [vmem:[#allocation2 + $0x8] sm:$0xff] %v437_v4  ;;  %446 = vst [vmem:[#allocation2 + $0x20] sm:$0xff] %v438_v5  ;;  %v440_v7 = vld [vmem:[#allocation3 + $0x38] sm:$0xff] }
  0x87   : > { %447 = vst [vmem:[#allocation2 + $0x28] sm:$0xff] %v439_v6  ;;  %448 = vst [vmem:[#allocation2 + $0x38] sm:$0xff] %v440_v7 }
  0x88 PF: > { %v1863_v8 = vld [vmem:[%s2414_s12 + $0x38] sm:$0xff]   ;;  %v1864_v9 = vld [vmem:[%s2414_s12 + $0x30] sm:$0xff]   ;;  %v2145_v10 = vmov 0.0   ;;  %vm2146_vm0 = vmmov 0   ;;  %v1866_v12 = vld [vmem:[%s2414_s12 + $0x28] sm:$0xff]   ;;  %v2147_v13 = vmov 0  }
  0x89   : > { %1584 = vmatprep.subr.bf16.mxu1 %v2145_v10  ;;  %1560 = vmatprep.subr.bf16.mxu0 %v1863_v8  ;;  %v2442_v11 = vld [vmem:[%s2420_s25 + $0x38] sm:$0xff]   ;;  %v2450_v14 = vld [vmem:[%s2420_s25 + $0x30] sm:$0xff]   ;;  %v1868_v15 = vld [vmem:[%s2414_s12 + $0x20] sm:$0xff]   ;;  %p1445_p0 = scmp.ne.s32.totalorder %s2300_s24, 1 }
  0x8a   : > { %1600 = vmatprep.mubr.msk.bf16.mxu1 %vm2146_vm0, %v2145_v10  ;;  %1561 = vmatpush3.bf16.msra.mxu0 %v1863_v8  ;;  %v2457_v16 = vld [vmem:[%s2420_s25 + $0x28] sm:$0xff]   ;;  %v1870_v17 = vld [vmem:[%s2414_s12 + $0x18] sm:$0xff]   ;;  %v2463_v18 = vld [vmem:[%s2420_s25 + $0x20] sm:$0xff]  }
  0x8b   : > { %1861 = vset.pattern.permute.xlu0 %v2147_v13  ;;  %1562 = vmatprep.subr.bf16.mxu0 %v1864_v9  ;;  %v449_v19 = vld [vmem:[#allocation2 + $0x30] sm:$0xff]  ;;  %v450_v20 = vld [vmem:[#allocation2] sm:$0xff]  ;;  %v2469_v23 = vld [vmem:[%s2420_s25 + $0x18] sm:$0xff]  }
  0x8c   : > { %1585 = vmatpush3.bf16.msra.mxu1 %v2442_v11  ;;  %1862 = vset.pattern.permute.xlu1 %v2147_v13  ;;  %v1872_v21 = vld [vmem:[%s2414_s12 + $0x10] sm:$0xff]   ;;  %v457_v22 = vpack.c.bf16 %v450_v20, %v449_v19  ;;  %v2475_v24 = vld [vmem:[%s2754_s1] sm:$0xff]  ;;  %v1874_v26 = vld [vmem:[%s2414_s12 + $0x8] sm:$0xff]  }
  0x8d   : > { %1586 = vmatprep.subr.bf16.mxu1 %v2145_v10  ;;  %vm713_vm1 = vcmp.gt.s32.totalorder %v2475_v24, 0  ;;  %vm765_vm2 = vcmp.gt.s32.totalorder %v2475_v24, 1  ;;  %v2483_v27 = vld [vmem:[%s2420_s25 + $0x10] sm:$0xff]   ;;  %vm924_vm3 = vcmp.gt.s32.totalorder %v2475_v24, 4  ;;  %v1876_v29 = vld [vmem:[%s2414_s12] sm:$0xff]   ;;  %v2491_v30 = vld [vmem:[%s2420_s25 + $0x8] sm:$0xff]  }
  0x8e   : > { %1563 = vmatpush3.bf16.msra.mxu0 %v1864_v9  ;;  %1576 = vmatprep.mubr.bf16.mxu0 %v457_v22  ;;  %v714_v25 = vsel %vm713_vm1, 1, %v2147_v13  ;;  %v766_v28 = vsel %vm765_vm2, 1, %v2147_v13  ;;  %v925_v31 = vsel %vm924_vm3, 1, %v2147_v13  ;;  %v451_v32 = vld [vmem:[#allocation2 + $0x18] sm:$0xff]  ;;  %v452_v33 = vld [vmem:[#allocation2 + $0x10] sm:$0xff]  ;;  %vm1030_vm4 = vcmp.gt.s32.totalorder %v2475_v24, 6 }
  0x8f   : > { %1564 = vmatprep.subr.bf16.mxu0 %v1866_v12  ;;  %716 = vperm.xlu0 %1861, %v714_v25   ;;  %v2498_v34 = vld [vmem:[%s2420_s25] sm:$0xff]   ;;  %v458_v35 = vpack.c.bf16 %v452_v33, %v451_v32  ;;  %v1031_v36 = vsel %vm1030_vm4, 1, %v2147_v13  ;;  %v453_v37 = vld [vmem:[#allocation2 + $0x8] sm:$0xff]  ;;  %v456_v41 = vld [vmem:[#allocation2 + $0x38] sm:$0xff]  ;;  %vm818_vm7 = vcmp.gt.s32.totalorder %v2475_v24, 2  ;;  %vm871_vm8 = vcmp.gt.s32.totalorder %v2475_v24, 3 }
  0x90   : > { %1587 = vmatpush3.bf16.msra.mxu1 %v2450_v14  ;;  %v454_v38 = vld [vmem:[#allocation2 + $0x20] sm:$0xff]  ;;  %v455_v40 = vld [vmem:[#allocation2 + $0x28] sm:$0xff]  ;;  %v819_v56 = vsel %vm818_vm7, 1, %v2147_v13  ;;  %v872_v57 = vsel %vm871_vm8, 1, %v2147_v13  ;;  %vm977_vm9 = vcmp.gt.s32.totalorder %v2475_v24, 5  ;;  %vm1083_vm10 = vcmp.gt.s32.totalorder %v2475_v24, 7 }
  0x91   : > { %1588 = vmatprep.subr.bf16.mxu1 %v2145_v10  ;;  %v459_v39 = vpack.c.bf16 %v454_v38, %v453_v37  ;;  %v460_v42 = vpack.c.bf16 %v456_v41, %v455_v40  ;;  %v2549_v45 = vld [vmem:[%s427_s16] ss:$0 sm:$0xff]  ;;  %821 = vperm.xlu1 %1862, %v819_v56   ;;  %v978_v58 = vsel %vm977_vm9, 1, %v2147_v13  ;;  %v1084_v59 = vsel %vm1083_vm10, 1, %v2147_v13 }
  0x92   : > { %1565 = vmatpush3.bf16.msra.mxu0 %v1866_v12 }
  0x93   : > { %1566 = vmatprep.subr.bf16.mxu0 %v1868_v15  ;;  %768 = vperm.xlu0 %1861, %v766_v28  }
  0x94   : > { %1589 = vmatpush3.bf16.msra.mxu1 %v2457_v16 }
  0x95   : > { %1590 = vmatprep.subr.bf16.mxu1 %v2145_v10  ;;  %874 = vperm.xlu1 %1862, %v872_v57  }
  0x96   : > { %1567 = vmatpush3.bf16.msra.mxu0 %v1868_v15 }
  0x97   : > { %1568 = vmatprep.subr.bf16.mxu0 %v1870_v17  ;;  %927 = vperm.xlu0 %1861, %v925_v31  }
  0x98   : > { %1591 = vmatpush3.bf16.msra.mxu1 %v2463_v18 }
  0x99   : > { %1592 = vmatprep.subr.bf16.mxu1 %v2145_v10  ;;  %980 = vperm.xlu1 %1862, %v978_v58  }
  0x9a   : > { %1569 = vmatpush3.bf16.msra.mxu0 %v1870_v17 }
  0x9b   : > { %1570 = vmatprep.subr.bf16.mxu0 %v1872_v21  ;;  %1033 = vperm.xlu0 %1861, %v1031_v36  }
  0x9c   : > { %1593 = vmatpush3.bf16.msra.mxu1 %v2469_v23 }
  0x9d   : > { %1594 = vmatprep.subr.bf16.mxu1 %v2145_v10  ;;  %1086 = vperm.xlu1 %1862, %v1084_v59  }
  0x9e   : > { %1571 = vmatpush3.bf16.msra.mxu0 %v1872_v21 }
  0x9f   : > { %1572 = vmatprep.subr.bf16.mxu0 %v1874_v26 }
  0xa0   : > { %1595 = vmatpush3.bf16.msra.mxu1 %v2483_v27 }
  0xa1   : > { %1596 = vmatprep.subr.bf16.mxu1 %v2145_v10 }
  0xa2   : > { %1573 = vmatpush3.bf16.msra.mxu0 %v1874_v26 }
  0xa3   : > { %1574 = vmatprep.subr.bf16.mxu0 %v1876_v29 }
  0xa4   : > { %1597 = vmatpush3.bf16.msra.mxu1 %v2491_v30 }
  0xa5   : > { %1598 = vmatprep.subr.bf16.mxu1 %v2145_v10 }
  0xa6   : > { %1575 = vmatpush3.bf16.msra.mxu0 %v1876_v29 }
  0xa7   : > { %1604 = vmatprep.subr.bf16.mxu0 %v2145_v10 }
  0xa8   : > { %1599 = vmatpush3.bf16.msra.mxu1 %v2498_v34 }
  0xa9   : > { %1624 = vmatprep.subr.bf16.mxu1 %v2145_v10  ;;  %1577 = vmatmul.mubr.bf16.vlgmr.msra.gmra.mxu0 %v458_v35 }
  0xaa   : > { %1605 = vmatpush3.bf16.msra.mxu0 %v2442_v11  ;;  %1580 = vmatprep.mubr.bf16.mxu0 %v459_v39 }
  0xab   : > { %1601 = vmatmul.mubr.bf16.vlgmr.msra.gmra.mxu1 %v2147_v13  ;;  %1606 = vmatprep.subr.bf16.mxu0 %v2145_v10 }
  0xac   : > { %1625 = vmatpush3.bf16.msra.mxu1 %v2442_v11  ;;  %1640 = vmatprep.mubr.msk.bf16.mxu1 %vm2146_vm0, %v2145_v10 }
  0xad   : > { %1626 = vmatprep.subr.bf16.mxu1 %v2145_v10 }
  0xae   : > { %1607 = vmatpush3.bf16.msra.mxu0 %v2450_v14 }
  0xaf   : > { %1608 = vmatprep.subr.bf16.mxu0 %v2145_v10 }
  0xb0   : > { %1627 = vmatpush3.bf16.msra.mxu1 %v2450_v14 }
  0xb1   : > { %1628 = vmatprep.subr.bf16.mxu1 %v2145_v10  ;;  %1581 = vmatmul.mubr.bf16.gmra.mxu0 %v460_v42 }
  0xb2   : > { %1609 = vmatpush3.bf16.msra.mxu0 %v2457_v16  ;;  %1620 = vmatprep.mubr.msk.bf16.mxu0 %vm2146_vm0, %v2145_v10 }
  0xb3   : > { %1610 = vmatprep.subr.bf16.mxu0 %v2145_v10 }
  0xb4   : > { %1629 = vmatpush3.bf16.msra.mxu1 %v2457_v16 }
  0xb5   : > { %1630 = vmatprep.subr.bf16.mxu1 %v2145_v10 }
  0xb6   : > { %1611 = vmatpush3.bf16.msra.mxu0 %v2463_v18 }
  0xb7   : > { %1612 = vmatprep.subr.bf16.mxu0 %v2145_v10 }
  0xb8   : > { %1631 = vmatpush3.bf16.msra.mxu1 %v2463_v18 }
  0xb9   : > { %1632 = vmatprep.subr.bf16.mxu1 %v2145_v10 }
  0xba   : > { %1613 = vmatpush3.bf16.msra.mxu0 %v2469_v23 }
  0xbb   : > { %1614 = vmatprep.subr.bf16.mxu0 %v2145_v10 }
  0xbc   : > { %1633 = vmatpush3.bf16.msra.mxu1 %v2469_v23 }
  0xbd   : > { %1634 = vmatprep.subr.bf16.mxu1 %v2145_v10 }
  0xbe   : > { %1615 = vmatpush3.bf16.msra.mxu0 %v2483_v27 }
  0xbf   : > { %1616 = vmatprep.subr.bf16.mxu0 %v2145_v10 }
  0xc0   : > { %1635 = vmatpush3.bf16.msra.mxu1 %v2483_v27 }
  0xc1   : > { %1636 = vmatprep.subr.bf16.mxu1 %v2145_v10 }
  0xc2   : > { %1617 = vmatpush3.bf16.msra.mxu0 %v2491_v30 }
  0xc3   : > { %1618 = vmatprep.subr.bf16.mxu0 %v2145_v10 }
  0xc4   : > { %1637 = vmatpush3.bf16.msra.mxu1 %v2491_v30 }
  0xc5   : > { %1638 = vmatprep.subr.bf16.mxu1 %v2145_v10 }
  0xc6   : > { %1619 = vmatpush3.bf16.msra.mxu0 %v2498_v34 }
  0xc7   : > { %1644 = vmatprep.subr.bf16.mxu0 %v2145_v10 }
  0xc8   : > { %1639 = vmatpush3.bf16.msra.mxu1 %v2498_v34 }
  0xc9   : > { %1664 = vmatprep.subr.bf16.mxu1 %v2145_v10 }
 0x10a   : > { %v717_v52 = vpop.permute.xlu0 %716 }
 0x10b   : > { %vm718_vm5 = vcmp.eq.s32.totalorder %v717_v52, 1 }
 0x10c   : > { %vm1442_vm6 = vmpackc.low %vm718_vm5, %vm718_vm5  ;;  %v822_v25 = vpop.permute.xlu1 %821 }
 0x10d   : > { %vm823_vm12 = vcmp.eq.s32.totalorder %v822_v25, 1 }
 0x10e   : > { %v769_v8 = vpop.permute.xlu0 %768 }
 0x10f   : > { %vm770_vm11 = vcmp.eq.s32.totalorder %v769_v8, 1 }
 0x110   : > { %v875_v39 = vpop.permute.xlu1 %874 }
 0x111   : > { %vm876_vm13 = vcmp.eq.s32.totalorder %v875_v39, 1 }
 0x114   : > { %v981_v57 = vpop.permute.xlu1 %980 }
 0x115   : > { %vm982_vm15 = vcmp.eq.s32.totalorder %v981_v57, 1 }
 0x169   : > { %v2542_v43 = vpop.f32.mrf.mxu0 }
 0x16a   : > { %v575_v17 = vadd.f32 %v2542_v43, %v2549_v45 }
 0x16b   : > { %v705_v44 = vpop.f32.mrf.mxu1  ;;  %v566_v46 = vpop.f32.mrf.mxu0 }
 0x16c   : > { %v567_v47 = vadd.f32 %v2549_v45, %v566_v46 }
 0x16d   : > { %v1602_v48 = vpop.f32.mrf.mxu1  ;;  %v2579_v60 = vpop.f32.mrf.mxu0 }
 0x16e   : > { %v711_v49 = vadd.f32 %v705_v44, %v567_v47  ;;  %v578_v32 = vadd.f32 %v2579_v60, %v2549_v45 }
 0x16f   : > { %v708_v50 = vpop.f32.mrf.mxu1  ;;  %v569_v61 = vpop.f32.mrf.mxu0 }
 0x170   : > { %1879 = vtanh.f32 %v711_v49  ;;  %v570_v2 = vadd.f32 %v2549_v45, %v569_v61 }
 0x171   : > { %v1603_v51 = vpop.f32.mrf.mxu1  ;;  %v2581_v62 = vpop.f32.mrf.mxu0 }
 0x172   : > { %v928_v51 = vpop.permute.xlu0 %927 }
 0x173   : > { %v2583_v63 = vpop.f32.mrf.mxu0  ;;  %vm929_vm14 = vcmp.eq.s32.totalorder %v928_v51, 1 }
 0x174   : > { %v583_v44 = vadd.f32 %v2549_v45, %v2583_v63 }
 0x175   : > { %v2585_v0 = vpop.f32.mrf.mxu0 }
 0x177   : > { %v2587_v1 = vpop.f32.mrf.mxu0 }
 0x17d   : > { %v1880_v53 = vpop.eup %1879 }
 0x17e   : > { %v1443_v54 = vpack.c.bf16 %v1880_v53, %v1880_v53  ;;  %v719_v55 = vsel %vm718_vm5, %v1880_v53, 0.0 }
 0x17f   : > { %720 = vst [vmem:[#allocation2 + $0x30] sm:$0xff] %v719_v55  ;;  %1100 = vst [vmem:[%s2434_s23] sm:$0xff] %v719_v55 }
 0x180   : > { %1621 = vmatmul.mubr.msk.bf16.vlgmr.msra.gmra.mxu0 %vm1442_vm6, %v1443_v54 }
 0x181   : > { %1645 = vmatpush3.bf16.msra.mxu0 %v2442_v11  ;;  %1660 = vmatprep.mubr.msk.bf16.mxu0 %vm2146_vm0, %v2145_v10 }
 0x182   : > { %1646 = vmatprep.subr.bf16.mxu0 %v2145_v10 }
 0x185   : > { %1647 = vmatpush3.bf16.msra.mxu0 %v2450_v14 }
 0x186   : > { %1648 = vmatprep.subr.bf16.mxu0 %v2145_v10 }
 0x189   : > { %1649 = vmatpush3.bf16.msra.mxu0 %v2457_v16 }
 0x18a   : > { %1650 = vmatprep.subr.bf16.mxu0 %v2145_v10 }
 0x18d   : > { %1651 = vmatpush3.bf16.msra.mxu0 %v2463_v18 }
 0x18e   : > { %1652 = vmatprep.subr.bf16.mxu0 %v2145_v10 }
 0x191   : > { %1653 = vmatpush3.bf16.msra.mxu0 %v2469_v23 }
 0x192   : > { %1654 = vmatprep.subr.bf16.mxu0 %v2145_v10 }
 0x195   : > { %1655 = vmatpush3.bf16.msra.mxu0 %v2483_v27 }
 0x196   : > { %1656 = vmatprep.subr.bf16.mxu0 %v2145_v10 }
 0x199   : > { %1657 = vmatpush3.bf16.msra.mxu0 %v2491_v30 }
 0x19a   : > { %1658 = vmatprep.subr.bf16.mxu0 %v2145_v10 }
 0x19d   : > { %1659 = vmatpush3.bf16.msra.mxu0 %v2498_v34 }
 0x19e   : > { %1684 = vmatprep.subr.bf16.mxu0 %v2145_v10 }
 0x240   : > { %v757_v3 = vpop.f32.mrf.mxu0 }
 0x241   : > { %v763_v4 = vadd.f32 %v757_v3, %v570_v2  ;;  %v1034_v2 = vpop.permute.xlu0 %1033 }
 0x242   : > { %v1622_v5 = vpop.f32.mrf.mxu0 }
 0x243   : > { %1881 = vtanh.f32 %v763_v4 }
 0x244   : > { %v760_v6 = vpop.f32.mrf.mxu0 }
 0x246   : > { %v1623_v7 = vpop.f32.mrf.mxu0 }
 0x247   : > { %v594_v7 = vadd.f32 %v2585_v0, %v2549_v45 }
 0x250   : > { %v1882_v9 = vpop.eup %1881 }
 0x251   : > { %v772_v12 = vsel %vm770_vm11, %v1882_v9, 0.0  ;;  %v771_v13 = vsel %vm770_vm11, %v1882_v9, %v719_v55 }
 0x252   : > { %773 = vst [vmem:[#allocation2] sm:$0xff] %v772_v12  ;;  %1101 = vst [vmem:[%s2434_s23 + $0x8] sm:$0xff] %v772_v12  ;;  %v775_v15 = vpack.c.bf16 %v771_v13, %v771_v13 }
 0x254   : > { %1641 = vmatmul.mubr.bf16.vlgmr.msra.gmra.mxu1 %v775_v15  ;;  %v1087_v15 = vpop.permute.xlu1 %1086 }
 0x255   : > { %1665 = vmatpush3.bf16.msra.mxu1 %v2442_v11  ;;  %1680 = vmatprep.mubr.msk.bf16.mxu1 %vm2146_vm0, %v2145_v10  ;;  %vm1088_vm1 = vcmp.eq.s32.totalorder %v1087_v15, 1 }
 0x256   : > { %1666 = vmatprep.subr.bf16.mxu1 %v2145_v10 }
 0x259   : > { %1667 = vmatpush3.bf16.msra.mxu1 %v2450_v14 }
 0x25a   : > { %1668 = vmatprep.subr.bf16.mxu1 %v2145_v10 }
 0x25d   : > { %1669 = vmatpush3.bf16.msra.mxu1 %v2457_v16 }
 0x25e   : > { %1670 = vmatprep.subr.bf16.mxu1 %v2145_v10 }
 0x261   : > { %1671 = vmatpush3.bf16.msra.mxu1 %v2463_v18 }
 0x262   : > { %1672 = vmatprep.subr.bf16.mxu1 %v2145_v10 }
 0x265   : > { %1673 = vmatpush3.bf16.msra.mxu1 %v2469_v23 }
 0x266   : > { %1674 = vmatprep.subr.bf16.mxu1 %v2145_v10 }
 0x269   : > { %1675 = vmatpush3.bf16.msra.mxu1 %v2483_v27 }
 0x26a   : > { %1676 = vmatprep.subr.bf16.mxu1 %v2145_v10 }
 0x26d   : > { %1677 = vmatpush3.bf16.msra.mxu1 %v2491_v30 }
 0x26e   : > { %1678 = vmatprep.subr.bf16.mxu1 %v2145_v10 }
 0x271   : > { %1679 = vmatpush3.bf16.msra.mxu1 %v2498_v34 }
 0x272   : > { %1704 = vmatprep.subr.bf16.mxu1 %v2145_v10 }
 0x314   : > { %v810_v19 = vpop.f32.mrf.mxu1 }
 0x315   : > { %v816_v20 = vadd.f32 %v810_v19, %v575_v17 }
 0x316   : > { %v1642_v21 = vpop.f32.mrf.mxu1 }
 0x317   : > { %1883 = vtanh.f32 %v816_v20 }
 0x318   : > { %v813_v22 = vpop.f32.mrf.mxu1 }
 0x31a   : > { %v1643_v24 = vpop.f32.mrf.mxu1 }
 0x324   : > { %v1884_v26 = vpop.eup %1883 }
 0x325   : > { %v824_v28 = vsel %vm823_vm12, %v1884_v26, %v771_v13  ;;  %v825_v29 = vsel %vm823_vm12, %v1884_v26, 0.0 }
 0x326   : > { %826 = vst [vmem:[#allocation2 + $0x18] sm:$0xff] %v825_v29  ;;  %v828_v31 = vpack.c.bf16 %v824_v28, %v824_v28  ;;  %1102 = vst [vmem:[%s2434_s23 + $0x10] sm:$0xff] %v825_v29 }
 0x328   : > { %1661 = vmatmul.mubr.bf16.vlgmr.msra.gmra.mxu0 %v828_v31 }
 0x329   : > { %1685 = vmatpush3.bf16.msra.mxu0 %v2442_v11  ;;  %1700 = vmatprep.mubr.msk.bf16.mxu0 %vm2146_vm0, %v2145_v10 }
 0x32a   : > { %1686 = vmatprep.subr.bf16.mxu0 %v2145_v10 }
 0x32d   : > { %1687 = vmatpush3.bf16.msra.mxu0 %v2450_v14 }
 0x32e   : > { %1688 = vmatprep.subr.bf16.mxu0 %v2145_v10 }
 0x331   : > { %1689 = vmatpush3.bf16.msra.mxu0 %v2457_v16 }
 0x332   : > { %1690 = vmatprep.subr.bf16.mxu0 %v2145_v10 }
 0x335   : > { %1691 = vmatpush3.bf16.msra.mxu0 %v2463_v18 }
 0x336   : > { %1692 = vmatprep.subr.bf16.mxu0 %v2145_v10 }
 0x339   : > { %1693 = vmatpush3.bf16.msra.mxu0 %v2469_v23 }
 0x33a   : > { %1694 = vmatprep.subr.bf16.mxu0 %v2145_v10 }
 0x33d   : > { %1695 = vmatpush3.bf16.msra.mxu0 %v2483_v27 }
 0x33e   : > { %1696 = vmatprep.subr.bf16.mxu0 %v2145_v10 }
 0x341   : > { %1697 = vmatpush3.bf16.msra.mxu0 %v2491_v30 }
 0x342   : > { %1698 = vmatprep.subr.bf16.mxu0 %v2145_v10 }
 0x345   : > { %1699 = vmatpush3.bf16.msra.mxu0 %v2498_v34 }
 0x346   : > { %1724 = vmatprep.subr.bf16.mxu0 %v2145_v10 }
 0x3e8   : > { %v863_v33 = vpop.f32.mrf.mxu0 }
 0x3e9   : > { %v869_v35 = vadd.f32 %v863_v33, %v578_v32 }
 0x3ea   : > { %v1662_v36 = vpop.f32.mrf.mxu0 }
 0x3eb   : > { %1885 = vtanh.f32 %v869_v35 }
 0x3ec   : > { %v866_v37 = vpop.f32.mrf.mxu0 }
 0x3ee   : > { %v1663_v38 = vpop.f32.mrf.mxu0 }
 0x3f8   : > { %v1886_v40 = vpop.eup %1885 }
 0x3f9   : > { %v878_v41 = vsel %vm876_vm13, %v1886_v40, 0.0  ;;  %v877_v42 = vsel %vm876_vm13, %v1886_v40, %v824_v28 }
 0x3fa   : > { %879 = vst [vmem:[#allocation2 + $0x10] sm:$0xff] %v878_v41  ;;  %1103 = vst [vmem:[%s2434_s23 + $0x18] sm:$0xff] %v878_v41  ;;  %v881_v43 = vpack.c.bf16 %v877_v42, %v877_v42 }
 0x3fc   : > { %1681 = vmatmul.mubr.bf16.vlgmr.msra.gmra.mxu1 %v881_v43 }
 0x3fd   : > { %1705 = vmatpush3.bf16.msra.mxu1 %v2442_v11  ;;  %1720 = vmatprep.mubr.msk.bf16.mxu1 %vm2146_vm0, %v2145_v10 }
 0x3fe   : > { %1706 = vmatprep.subr.bf16.mxu1 %v2145_v10 }
 0x401   : > { %1707 = vmatpush3.bf16.msra.mxu1 %v2450_v14 }
 0x402   : > { %1708 = vmatprep.subr.bf16.mxu1 %v2145_v10 }
 0x405   : > { %1709 = vmatpush3.bf16.msra.mxu1 %v2457_v16 }
 0x406   : > { %1710 = vmatprep.subr.bf16.mxu1 %v2145_v10 }
 0x409   : > { %1711 = vmatpush3.bf16.msra.mxu1 %v2463_v18 }
 0x40a   : > { %1712 = vmatprep.subr.bf16.mxu1 %v2145_v10 }
 0x40d   : > { %1713 = vmatpush3.bf16.msra.mxu1 %v2469_v23 }
 0x40e   : > { %1714 = vmatprep.subr.bf16.mxu1 %v2145_v10 }
 0x411   : > { %1715 = vmatpush3.bf16.msra.mxu1 %v2483_v27 }
 0x412   : > { %1716 = vmatprep.subr.bf16.mxu1 %v2145_v10 }
 0x415   : > { %1717 = vmatpush3.bf16.msra.mxu1 %v2491_v30 }
 0x416   : > { %1718 = vmatprep.subr.bf16.mxu1 %v2145_v10 }
 0x419   : > { %1719 = vmatpush3.bf16.msra.mxu1 %v2498_v34 }
 0x4bc   : > { %v916_v46 = vpop.f32.mrf.mxu1 }
 0x4bd   : > { %v922_v47 = vadd.f32 %v916_v46, %v583_v44 }
 0x4be   : > { %v1682_v48 = vpop.f32.mrf.mxu1 }
 0x4bf   : > { %1887 = vtanh.f32 %v922_v47 }
 0x4c0   : > { %v919_v49 = vpop.f32.mrf.mxu1 }
 0x4c2   : > { %v1683_v50 = vpop.f32.mrf.mxu1 }
 0x4cc   : > { %v1888_v52 = vpop.eup %1887 }
 0x4cd   : > { %v931_v53 = vsel %vm929_vm14, %v1888_v52, 0.0  ;;  %v930_v54 = vsel %vm929_vm14, %v1888_v52, %v877_v42 }
 0x4ce   : > { %932 = vst [vmem:[#allocation2 + $0x8] sm:$0xff] %v931_v53  ;;  %1104 = vst [vmem:[%s2434_s23 + $0x20] sm:$0xff] %v931_v53  ;;  %v934_v55 = vpack.c.bf16 %v930_v54, %v930_v54 }
 0x4d0   : > { %1701 = vmatmul.mubr.bf16.vlgmr.msra.gmra.mxu0 %v934_v55 }
 0x4d1   : > { %1725 = vmatpush3.bf16.msra.mxu0 %v2442_v11  ;;  %1740 = vmatprep.mubr.msk.bf16.mxu0 %vm2146_vm0, %v2145_v10  ;;  %v586_v11 = vadd.f32 %v2549_v45, %v2587_v1  ;;  %vm1035_vm0 = vcmp.eq.s32.totalorder %v1034_v2, 1 }
 0x4d2   : > { %1726 = vmatprep.subr.bf16.mxu0 %v2145_v10 }
 0x4d5   : > { %1727 = vmatpush3.bf16.msra.mxu0 %v2450_v14 }
 0x4d6   : > { %1728 = vmatprep.subr.bf16.mxu0 %v2145_v10 }
 0x4d9   : > { %1729 = vmatpush3.bf16.msra.mxu0 %v2457_v16 }
 0x4da   : > { %1730 = vmatprep.subr.bf16.mxu0 %v2145_v10 }
 0x4dd   : > { %1731 = vmatpush3.bf16.msra.mxu0 %v2463_v18 }
 0x4de   : > { %1732 = vmatprep.subr.bf16.mxu0 %v2145_v10 }
 0x4e1   : > { %1733 = vmatpush3.bf16.msra.mxu0 %v2469_v23 }
 0x4e2   : > { %1734 = vmatprep.subr.bf16.mxu0 %v2145_v10 }
 0x4e5   : > { %1735 = vmatpush3.bf16.msra.mxu0 %v2483_v27 }
 0x4e6   : > { %1736 = vmatprep.subr.bf16.mxu0 %v2145_v10 }
 0x4e9   : > { %1737 = vmatpush3.bf16.msra.mxu0 %v2491_v30  ;;  %v591_v30 = vadd.f32 %v2581_v62, %v2549_v45 }
 0x4ea   : > { %1738 = vmatprep.subr.bf16.mxu0 %v2145_v10 }
 0x4ed   : > { %1739 = vmatpush3.bf16.msra.mxu0 %v2498_v34 }
 0x590   : > { %v969_v14 = vpop.f32.mrf.mxu0 }
 0x591   : > { %v975_v16 = vadd.f32 %v969_v14, %v586_v11 }
 0x592   : > { %v1702_v18 = vpop.f32.mrf.mxu0 }
 0x593   : > { %1889 = vtanh.f32 %v975_v16 }
 0x594   : > { %v972_v23 = vpop.f32.mrf.mxu0 }
 0x596   : > { %v1703_v56 = vpop.f32.mrf.mxu0 }
 0x5a0   : > { %v1890_v27 = vpop.eup %1889 }
 0x5a1   : > { %v984_v58 = vsel %vm982_vm15, %v1890_v27, 0.0  ;;  %v983_v59 = vsel %vm982_vm15, %v1890_v27, %v930_v54 }
 0x5a2   : > { %985 = vst [vmem:[#allocation2 + $0x20] sm:$0xff] %v984_v58  ;;  %1105 = vst [vmem:[%s2434_s23 + $0x28] sm:$0xff] %v984_v58  ;;  %v987_v10 = vpack.c.bf16 %v983_v59, %v983_v59 }
 0x5a4   : > { %1721 = vmatmul.mubr.bf16.vlgmr.msra.gmra.mxu1 %v987_v10 }
 0x664   : > { %v1022_v34 = vpop.f32.mrf.mxu1 }
 0x665   : > { %v1028_v60 = vadd.f32 %v1022_v34, %v591_v30 }
 0x666   : > { %v1722_v61 = vpop.f32.mrf.mxu1 }
 0x667   : > { %1891 = vtanh.f32 %v1028_v60 }
 0x668   : > { %v1025_v63 = vpop.f32.mrf.mxu1 }
 0x66a   : > { %v1723_v1 = vpop.f32.mrf.mxu1 }
 0x674   : > { %v1892_v3 = vpop.eup %1891 }
 0x675   : > { %v1037_v4 = vsel %vm1035_vm0, %v1892_v3, 0.0  ;;  %v1036_v5 = vsel %vm1035_vm0, %v1892_v3, %v983_v59 }
 0x676   : > { %1038 = vst [vmem:[#allocation2 + $0x28] sm:$0xff] %v1037_v4  ;;  %1106 = vst [vmem:[%s2434_s23 + $0x30] sm:$0xff] %v1037_v4  ;;  %v1040_v6 = vpack.c.bf16 %v1036_v5, %v1036_v5 }
 0x678   : > { %1741 = vmatmul.mubr.bf16.vlgmr.msra.gmra.mxu0 %v1040_v6 }
 0x738   : > { %v1075_v62 = vpop.f32.mrf.mxu0 }
 0x739   : > { %v1081_v8 = vadd.f32 %v1075_v62, %v594_v7 }
 0x73a   : > { %v1742_v9 = vpop.f32.mrf.mxu0 }
 0x73b   : > { %1893 = vtanh.f32 %v1081_v8 }
 0x73c   : > { %v1078_v12 = vpop.f32.mrf.mxu0 }
 0x73e   : > { %v1743_v13 = vpop.f32.mrf.mxu0 }
 0x746   : > { %1111 = sbr.rel (%p1445_p0) target bundleno = 2099 (0x833), region = 72 }
 0x748   : > { %v1894_v17 = vpop.eup %1893 }
 0x749   : > { %v1089_v19 = vsel %vm1088_vm1, %v1894_v17, %v1036_v5  ;;  %v1090_v20 = vsel %vm1088_vm1, %v1894_v17, 0.0 }
 0x74a   : > { %1091 = vst [vmem:[#allocation2 + $0x38] sm:$0xff] %v1090_v20  ;;  %1107 = vst [vmem:[%s2434_s23 + $0x38] sm:$0xff] %v1090_v20 }
 0x74b   : > { %1112 = vst [vmem:[#allocation12] sm:$0xff] %v1089_v19  ;;  %v1895_v21 = vld [vmem:[#allocation9 + $0x38] sm:$0xff]   ;;  %v2148_v22 = vmov 0.0   ;;  %v1896_v45 = vld [vmem:[#allocation9 + $0x30] sm:$0xff]   ;;  %vm2149_vm2 = vmmov 0   ;;  %v1897_v0 = vld [vmem:[#allocation9 + $0x28] sm:$0xff]   ;;  %v1113_v31 = vpack.c.bf16 %v1089_v19, %v1089_v19 }
 0x74c   : > { %1744 = vmatprep.subr.bf16.mxu0 %v2148_v22  ;;  %1760 = vmatprep.mubr.msk.bf16.mxu0 %vm2149_vm2, %v2148_v22  ;;  %v1898_v24 = vld [vmem:[#allocation9 + $0x20] sm:$0xff]   ;;  %v1899_v25 = vld [vmem:[#allocation9 + $0x18] sm:$0xff]   ;;  %v1900_v26 = vld [vmem:[#allocation9 + $0x10] sm:$0xff]  }
 0x74d   : > { %1745 = vmatpush3.bf16.msra.mxu0 %v1895_v21  ;;  %v1901_v28 = vld [vmem:[#allocation9 + $0x8] sm:$0xff]   ;;  %v1902_v29 = vld [vmem:[#allocation9] sm:$0xff]  }
 0x74e   : > { %1746 = vmatprep.subr.bf16.mxu0 %v2148_v22  ;;  %v1446_v32 = vld [vmem:[%s2759_s6] ss:$0 sm:$0xff] }
 0x751   : > { %1747 = vmatpush3.bf16.msra.mxu0 %v1896_v45 }
 0x752   : > { %1748 = vmatprep.subr.bf16.mxu0 %v2148_v22 }
 0x755   : > { %1749 = vmatpush3.bf16.msra.mxu0 %v1897_v0 }
 0x756   : > { %1750 = vmatprep.subr.bf16.mxu0 %v2148_v22 }
 0x759   : > { %1751 = vmatpush3.bf16.msra.mxu0 %v1898_v24 }
 0x75a   : > { %1752 = vmatprep.subr.bf16.mxu0 %v2148_v22 }
 0x75d   : > { %1753 = vmatpush3.bf16.msra.mxu0 %v1899_v25 }
 0x75e   : > { %1754 = vmatprep.subr.bf16.mxu0 %v2148_v22 }
 0x761   : > { %1755 = vmatpush3.bf16.msra.mxu0 %v1900_v26 }
 0x762   : > { %1756 = vmatprep.subr.bf16.mxu0 %v2148_v22 }
 0x765   : > { %1757 = vmatpush3.bf16.msra.mxu0 %v1901_v28 }
 0x766   : > { %1758 = vmatprep.subr.bf16.mxu0 %v2148_v22 }
 0x769   : > { %1759 = vmatpush3.bf16.msra.mxu0 %v1902_v29 }
 0x76c   : > { %1761 = vmatmul.mubr.bf16.vlgmr.msra.gmra.mxu0 %v1113_v31 }
 0x82c   : > { %v1219_v33 = vpop.f32.mrf.mxu0 }
 0x82d   : > { %v1220_v35 = vadd.f32 %v1446_v32, %v1219_v33 }
 0x82e   : > { %v1762_v36 = vpop.f32.mrf.mxu0 }
 0x82f   : > { %1225 = vst [vmem:[#allocation14] sm:$0xff] %v1220_v35 }
 0x830   : > { %v1222_v37 = vpop.f32.mrf.mxu0 }
 0x832   : > { %v1763_v38 = vpop.f32.mrf.mxu0 }
 0x833 PF: > { %s2150_s28 = smov [#allocation12]   ;;  %s1466_s15 = sshll.u32 %s2300_s24, 10 }
 0x834   : > { %s1254_s2 = sshll.u32 %s2150_s28, 4  ;;  %s2687_s29 = scalar_lea.hbm %s2760_s7, %s1466_s15  ;;  %s1255_s2 = int_to_ptr.vmem [resolvable:$true] %s1254_s2 }
 0x835   : > { %s2011_s11 = scalar_lea.vmem %s1255_s2, 128  ;;  %p2797_p2 = scmp.eq.s32.totalorder %s2300_s24, 1 }
 0x836   : > { %p2012_p13 = scmp.ne.s32.totalorder %s1255_s2, %s2011_s11  ;;  %p2018_p1 = scmp.lt.s32.totalorder %s1255_s2, %s1255_s2 }
 0x837   : > { %p2019_p3 = scmp.lt.s32.totalorder %s2011_s11, %s2011_s11 }
 0x838   : > { %p2013_p12 = pnand %p2012_p13, %p2797_p2 }
 0x839   : > { %p2020_p8 = por %p2019_p3, %p2018_p1 }
 0x83a   : > { %p2014_p10 = pneg %p2013_p12 }
 0x83c   : > { %p2021_p5 = pnand %p2020_p8, %p2014_p10 }
 0x83e   : > { %2024 = shalt.err (!%p2021_p5)
}
 0x83f   : > { %p2798_p4 = pmov %p2797_p2  ;;  %s1240_s26 = sshll.u32 %s2434_s23, 4  ;;  %s2697_s26 = int_to_ptr.vmem [resolvable:$true] %s1240_s26 }
 0x840   : > { %s2701_s27 = scalar_lea.sflag [#allocation5], %s367_s17  ;;  %s2035_s14 = scalar_lea.vmem %s2697_s26, 1024 }
 0x841   : > { %1778 = dma.vmem_to_hbm [thread:$0]  (%p2798_p4), %s1255_s2, 128, %s2761_s8, [#allocation13]  }
 0x842   : > { %p2036_p9 = scmp.ne.s32.totalorder %s2697_s26, %s2035_s14  ;;  %p2799_p11 = scmp.ne.s32.totalorder %s2784_s19, 0 }
 0x843   : > { %s2151_s21 = smov [#allocation11]  }
 0x844   : > { %p2037_p7 = pnand %p2036_p9, %p2799_p11  ;;  %s2039_s22 = sshll.u32 %s2151_s21, 4  ;;  %s2040_s22 = int_to_ptr.vmem [resolvable:$false] %s2039_s22 }
 0x845   : > { %s2041_s18 = scalar_lea.vmem %s2040_s22, 2048  ;;  %p2042_p0 = scmp.lt.s32.totalorder %s2697_s26, %s2040_s22 }
 0x846   : > { %p2038_p6 = pneg %p2037_p7  ;;  %p2043_p13 = scmp.lt.s32.totalorder %s2041_s18, %s2035_s14 }
 0x848   : > { %p2044_p2 = por %p2043_p13, %p2042_p0 }
 0x84a   : > { %p2045_p12 = pnand %p2044_p2, %p2038_p6 }
 0x84c   : > { %2048 = shalt.err (!%p2045_p12)
}
 0x84d   : > { %s2049_s17 = scalar_lea.hbm %s2687_s29, 1024  ;;  %s2053_s2 = scalar_lea.hbm %s2760_s7, 2048 }
 0x84e   : > { %p2050_p10 = scmp.ne.s32.totalorder %s2687_s29, %s2049_s17  ;;  %p2054_p8 = scmp.lt.s32.totalorder %s2687_s29, %s2760_s7 }
 0x84f   : > { %p2055_p5 = scmp.lt.s32.totalorder %s2053_s2, %s2049_s17 }
 0x850   : > { %p2051_p1 = pnand %p2050_p10, %p2799_p11 }
 0x851   : > { %p2056_p4 = por %p2055_p5, %p2054_p8 }
 0x852   : > { %p2052_p3 = pneg %p2051_p1 }
 0x854   : > { %p2057_p9 = pnand %p2056_p4, %p2052_p3 }
 0x856   : > { %2060 = shalt.err (!%p2057_p9)
}
 0x857   : > { %s2152_s25 = smov 128   ;;  %s2153_s11 = smov 8  }
 0x858   : > { %1776 = dma.vmem_to_hbm [thread:$0]  (%p2799_p11), %s2697_s26, 1024, %s2687_s29, %s2701_s27, %s2152_s25, %s2152_s25, %s2153_s11  }
 0x859   : > { %s2154_s13 = smov [#allocation14]   ;;  %p2800_p6 = scmp.eq.s32.totalorder %s2300_s24, 1 }
 0x85a   : > { %s1265_s16 = sshll.u32 %s2154_s13, 4  ;;  %s1266_s16 = int_to_ptr.vmem [resolvable:$true] %s1265_s16 }
 0x85b   : > { %s2061_s14 = scalar_lea.vmem %s1266_s16, 128  ;;  %p2068_p2 = scmp.lt.s32.totalorder %s1266_s16, %s1266_s16 }
 0x85c   : > { %p2062_p7 = scmp.ne.s32.totalorder %s1266_s16, %s2061_s14  ;;  %p2069_p12 = scmp.lt.s32.totalorder %s2061_s14, %s2061_s14 }
 0x85e   : > { %p2063_p0 = pnand %p2062_p7, %p2800_p6  ;;  %p2070_p10 = por %p2069_p12, %p2068_p2 }
 0x860   : > { %p2064_p13 = pneg %p2063_p0 }
 0x862   : > { %p2071_p1 = pnand %p2070_p10, %p2064_p13 }
 0x864   : > { %2074 = shalt.err (!%p2071_p1)
}
 0x865   : > { %p2801_p3 = pmov %p2800_p6 }
 0x867   : > { %1780 = dma.vmem_to_hbm [thread:$0]  (%p2801_p3), %s1266_s16, 128, %s2762_s9, [#allocation13]  }
 0x868   : > { %p2802_p11 = pmov %p2801_p3 }
 0x869   : > { %p2803_p8 = pmov %p2801_p3 }
 0x86a   : > { %2114 = dma.done.wait (%p2802_p11), [#allocation13], 256  }
 0x86b   : > { %2116 = vsyncadd (%p2803_p8), [#allocation13], 4294967040 }
 0x86c PF: > { %s2804_s19 = sld [smem:[#allocation21_spill]]  ;;  %s1285_s29 = sand.u32 1, %s2123_s30  }
 0x86d   : > { %p2805_p5 = scmp.ne.s32.totalorder %s2785_s20, 0  ;;  %s1286_s26 = scalar_lea.sflag [#allocation5], %s1285_s29 }
 0x872   : > { %p2806_p4 = scmp.ge.s32.totalorder %s2804_s19, 2 }
 0x874   : > { %p1801_p9 = pnand %p2806_p4, %p2805_p5 }
 0x876   : > { %p1802_p7 = pneg %p1801_p9 }
 0x878   : > { %2118 = dma.done.wait (%p1802_p7), %s1286_s26, 1024  }
 0x879   : > { %2120 = vsyncadd (%p1802_p7), %s1286_s26, 4294966272  ;;  %s2807_s12 = sld [smem:[#allocation22_spill]]  ;;  %s2810_s30 = smov %s2127_s10 }
 0x87a   : > { %s2808_s27 = sld [smem:[#allocation20_spill]] }
 0x87b   : > { %s2809_s11 = sld [smem:[#allocation23_spill]] }
 0x87f   : > { %p26_p6 = scmp.ge.s32.totalorder %s2807_s12, 4  }
 0x880   : > { %s2811_s10 = smov %s2808_s27 }
 0x881   :  { %28 = sbr.rel (!%p26_p6) target bundleno = 10 (0xa), region = 140 }
 0x886   :  { %1291 = vsyncpa [#allocation4], 1 }
 0x887   :  { %1293 = vsyncpa [#allocation4 + $0x1], 1 }
 0x888   :  { %1294 = vsyncpa [#allocation7], 1 }
 0x889   :  { %1296 = vsyncpa [#allocation7 + $0x1], 1 }
 0x88a   :  { %1297 = vsyncpa [#allocation10], 1 }
 0x88b   :  { %1298 = vsyncpa [#allocation5], 1 }
 0x88c   :  { %1300 = vsyncpa [#allocation5 + $0x1], 1 }
 0x88d   :  { %1301 = vsyncpa [#allocation13], 1 }

</bundles_post_ra>
